<compile_context>
chip_gen: v6e
topology: v6e:2x2x1
jax: 0.10.0
libtpu: 0.0.40
codegen_flags: <defaults>
</compile_context>

<pallas_src>
import functools

import jax
import jax.numpy as jnp
from jax.experimental import pallas as pl
from jax.experimental.pallas import tpu as pltpu


# ----------------------------------------------------------------------------
# Plain-JAX glue: ball query + neighbor gather (index selection only)
# ----------------------------------------------------------------------------
def query_ball_point(radius, nsample, points):
    """points: [B, C, N] -> idx [B, N, nsample] (PointNet++ semantics)."""
    B, C, N = points.shape
    xx = jnp.sum(points * points, axis=1)                        # [B, N]
    inner = jnp.einsum("bcn,bcm->bnm", points, points)           # [B, N, N]
    sqrdists = xx[:, :, None] + xx[:, None, :] - 2.0 * inner     # [B, N, N]
    arange = jnp.arange(N, dtype=jnp.int32)
    group_idx = jnp.where(sqrdists > radius * radius, N,
                          jnp.broadcast_to(arange, (B, N, N)))
    # nsample smallest indices == ascending sort + take first nsample,
    # implemented with top_k (O(N*nsample)) instead of a full sort.
    neg_topk, _ = jax.lax.top_k(-group_idx, nsample)             # [B, N, ns]
    group_idx = -neg_topk                                        # ascending
    group_first = group_idx[:, :, 0:1]
    group_idx = jnp.where(group_idx == N, group_first, group_idx)
    return group_idx


def gather_relative_features(points, idx):
    """points [B, C, N], idx [B, N, ns] -> rel [B, ns, C, N]
       rel[b, s, c, n] = points[b, c, idx[b, n, s]] - points[b, c, n]."""
    idx_t = jnp.transpose(idx, (0, 2, 1))                        # [B, ns, N]

    def per_batch(p, i):                                         # p [C, N], i [ns, N]
        return jax.vmap(lambda row: jnp.take(p, row, axis=1))(i)  # [ns, C, N]

    grouped = jax.vmap(per_batch)(points, idx_t)                 # [B, ns, C, N]
    return grouped - points[:, None, :, :]


def fold_bn_params(params, eps=1e-5):
    """Fold BatchNorm2d (eval mode) into the 1x1 conv: y = W_f @ x + b_f."""
    folded = []
    for (W, b_conv, gamma, beta, mean, var) in params:
        scale = gamma / jnp.sqrt(var + eps)                      # [Cout]
        Wf = (W * scale[:, None]).astype(jnp.float32)            # [Cout, Cin]
        bf = ((b_conv - mean) * scale + beta).astype(jnp.float32)[:, None]  # [Cout, 1]
        folded.append((Wf, bf))
    return folded


def _round_up(x, m):
    return -(-x // m) * m


def _vmem_padded_bytes(shape, dtype):
    """Approximate VMEM footprint of a buffer incl. sublane/lane tile padding."""
    itemsize = jnp.dtype(dtype).itemsize
    sub_tile = {4: 8, 2: 16, 1: 32}.get(itemsize, 8)
    dims = (1, 1) + tuple(int(d) for d in shape)
    lead = 1
    for d in dims[:-2]:
        lead *= d
    s = _round_up(dims[-2], sub_tile)
    l = _round_up(dims[-1], 128)
    return lead * s * l * itemsize


# ----------------------------------------------------------------------------
# Pallas kernel: fused (1x1 conv + folded BN + leaky_relu) MLP + max over nsample
# ----------------------------------------------------------------------------
def _relation_mlp_kernel(*refs, num_layers, nsample, tm, lane_stride):
    # refs = (center, rel, w0c, w0r, b0, [W1, b1, ...], out, h_all_scratch)
    n_wb = 3 + 2 * (num_layers - 1)
    center_ref, rel_ref = refs[0], refs[1]
    wb = refs[2:2 + n_wb]
    out_ref = refs[2 + n_wb]
    h_all = refs[3 + n_wb]                                       # VMEM [C1, ns*stride] bf16

    w0c = wb[0][...]                                             # f32  [C1, C]
    w0r = wb[1][...]                                             # bf16 [C1, C]
    b0 = wb[2][...]                                              # f32  [C1, 1]
    deeper = [(wb[3 + 2 * l][...], wb[4 + 2 * l][...])           # (bf16 W, f32 b)
              for l in range(num_layers - 1)]

    neg = jnp.float32(0.2)

    # Lane padding between per-sample slabs (only when tm < 128): zero it so
    # garbage never flows anywhere (it stays in its own lanes anyway).
    if lane_stride != tm:
        h_all[...] = jnp.zeros(h_all.shape, h_all.dtype)

    # Layer-0 contribution of the sample-independent center half (hoisted out
    # of the nsample loop); kept f32, it is one tiny matmul per tile.
    center = center_ref[0]                                       # f32 [C, tm]
    h_center = jnp.dot(w0c, center, preferred_element_type=jnp.float32) + b0

    # Layer 0: per-sample bf16 matmul (K = C, small) + leaky_relu in f32,
    # stored bf16 into the batched-activation scratch at lane-aligned offsets.
    for s in range(nsample):
        rel_s = rel_ref[0, s]                                    # bf16 [C, tm]
        h = h_center + jnp.dot(w0r, rel_s, preferred_element_type=jnp.float32)
        h = jnp.maximum(h, neg * h)                              # leaky_relu(0.2), f32
        off = s * lane_stride
        h_all[:, off:off + tm] = h.astype(h_all.dtype)

    # Deeper layers: ONE matmul over N = nsample*lane_stride per layer.
    h = h_all[...]                                               # bf16 [C1, ns*stride]
    if num_layers == 1:
        h = h.astype(jnp.float32)
    for li, (w, b) in enumerate(deeper):
        hf = jnp.dot(w, h, preferred_element_type=jnp.float32) + b
        hf = jnp.maximum(hf, neg * hf)                           # f32 elementwise
        if li < num_layers - 2:
            h = hf.astype(jnp.bfloat16)                          # feed next matmul bf16
        else:
            h = hf                                               # keep f32 for final max

    # Max over nsample via static lane slices of the batched activation.
    m = h[:, 0:tm]
    for s in range(1, nsample):
        off = s * lane_stride
        m = jnp.maximum(m, h[:, off:off + tm])
    out_ref[0] = m.astype(out_ref.dtype)


def relation_encoding_forward(points, params, *, radius, nsample, tm=1024,
                              out_dtype=jnp.bfloat16):
    """points: [B, C, N] float32 -> new_points: [B, D, N] (D = mlp[-1])."""
    B, C, N = points.shape
    assert tm % 128 == 0, "tm must be a multiple of 128 (lane-dense tiles)"

    idx = query_ball_point(radius, nsample, points)              # [B, N, ns]
    rel = gather_relative_features(points, idx)                  # [B, ns, C, N]
    rel = rel.astype(jnp.bfloat16)                               # dominant HBM read
    center = points.astype(jnp.float32)                          # [B, C, N] (small)

    folded = fold_bn_params(params)
    num_layers = len(folded)
    d_out = folded[-1][0].shape[0]
    c1 = folded[0][0].shape[0]
    max_width = max(W.shape[0] for (W, _) in folded)

    # Split the layer-0 weight into center / relative halves; narrow the MXU
    # operands (relative half + deeper layers) to bf16.
    W0, b0 = folded[0]
    w0c = W0[:, :C]                                              # f32
    w0r = W0[:, C:].astype(jnp.bfloat16)
    deeper_wb = [(W.astype(jnp.bfloat16), b) for (W, b) in folded[1:]]

    # Point tile: full N when small, else a multiple-of-128 lane tile; remainder
    # tiles are masked partial blocks (grid uses pl.cdiv).
    tm_eff = N if N <= tm else tm
    n_tiles = pl.cdiv(N, tm_eff)
    # NOTE(v7x): 2 TensorCores — keep B * n_tiles >= 2 (true for B >= 2).
    lane_stride = _round_up(tm_eff, 128)                         # aligned per-sample slabs

    in_specs = [
        pl.BlockSpec((1, C, tm_eff), lambda b, t: (b, 0, t)),
        pl.BlockSpec((1, nsample, C, tm_eff), lambda b, t: (b, 0, 0, t)),
        pl.BlockSpec(w0c.shape, lambda b, t: (0, 0)),
        pl.BlockSpec(w0r.shape, lambda b, t: (0, 0)),
        pl.BlockSpec(b0.shape, lambda b, t: (0, 0)),
    ]
    flat_args = [center, rel, w0c, w0r, b0]
    for (W, bias) in deeper_wb:
        in_specs.append(pl.BlockSpec(W.shape, lambda b, t: (0, 0)))
        in_specs.append(pl.BlockSpec(bias.shape, lambda b, t: (0, 0)))
        flat_args += [W, bias]

    # VMEM budget (with sublane/lane padding): double-buffered blocks + weights
    # + batched-activation scratch + live f32 intermediates; 2x headroom.
    block_bytes = (
        2 * _vmem_padded_bytes((1, C, tm_eff), jnp.float32)
        + 2 * _vmem_padded_bytes((1, nsample, C, tm_eff), jnp.bfloat16)
        + 2 * _vmem_padded_bytes((1, d_out, tm_eff), out_dtype)
        + 2 * sum(_vmem_padded_bytes(a.shape, a.dtype) for a in flat_args[2:])
        + _vmem_padded_bytes((c1, nsample * lane_stride), jnp.bfloat16)
        + 3 * _vmem_padded_bytes((max_width, nsample * lane_stride), jnp.float32))
    vmem_limit = int(min(48 * 1024 * 1024, max(8 * 1024 * 1024, 2 * block_bytes)))

    # Cost estimate so XLA overlaps the ball query / gather with the kernel.
    flops = 2 * B * N * nsample * sum(int(W.shape[0]) * int(W.shape[1])
                                      for (W, _) in folded)
    bytes_accessed = (int(rel.size) * 2 + int(center.size) * 4
                      + sum(int(a.size) * jnp.dtype(a.dtype).itemsize
                            for a in flat_args[2:])
                      + B * d_out * N * jnp.dtype(out_dtype).itemsize)
    cost = pl.CostEstimate(flops=flops, transcendentals=0,
                           bytes_accessed=bytes_accessed)

    kernel = functools.partial(_relation_mlp_kernel, num_layers=num_layers,
                               nsample=nsample, tm=tm_eff,
                               lane_stride=lane_stride)

    out = pl.pallas_call(
        kernel,
        out_shape=jax.ShapeDtypeStruct((B, d_out, N), out_dtype),
        grid=(B, n_tiles),
        in_specs=in_specs,
        out_specs=pl.BlockSpec((1, d_out, tm_eff), lambda b, t: (b, 0, t)),
        scratch_shapes=[pltpu.VMEM((c1, nsample * lane_stride), jnp.bfloat16)],
        compiler_params=pltpu.CompilerParams(
            dimension_semantics=("parallel", "parallel"),
            vmem_limit_bytes=vmem_limit),
        cost_estimate=cost,
    )(*flat_args)

    return out                                                   # [B, D, N]


# ----------------------------------------------------------------------------
# Pure-JAX references (f32 and quantization-matched) for correctness checks
# ----------------------------------------------------------------------------
def relation_encoding_reference(points, params, *, radius, nsample,
                                quantized=False):
    B, C, N = points.shape
    folded = fold_bn_params(params)
    num_layers = len(folded)
    W0, b0 = folded[0]
    w0c, w0r = W0[:, :C], W0[:, C:]

    idx = query_ball_point(radius, nsample, points)
    rel = gather_relative_features(points, idx)                  # [B, ns, C, N]
    if quantized:
        rel = rel.astype(jnp.bfloat16)
        w0r = w0r.astype(jnp.bfloat16)

    h_center = jnp.einsum("oc,bcn->bon", w0c, points) + b0[None]      # [B, C1, N]
    h = (jnp.einsum("oc,bscn->bson", w0r, rel,
                    preferred_element_type=jnp.float32)
         + h_center[:, None])                                          # [B, ns, C1, N]
    h = jnp.maximum(h, 0.2 * h)
    if quantized:
        h = h.astype(jnp.bfloat16)

    for li, (W, b) in enumerate(folded[1:]):
        Wq = W.astype(jnp.bfloat16) if quantized else W
        hf = (jnp.einsum("oc,bscn->bson", Wq, h,
                         preferred_element_type=jnp.float32)
              + b[None, None])
        hf = jnp.maximum(hf, 0.2 * hf)
        if quantized and li < num_layers - 2:
            h = hf.astype(jnp.bfloat16)
        else:
            h = hf

    out = jnp.max(h.astype(jnp.float32), axis=1)                 # [B, D, N]
    if quantized:
        out = out.astype(jnp.bfloat16)
    return out.astype(jnp.float32)


# ----------------------------------------------------------------------------
def make_params(key, in_channel, mlp):
    """Deterministic synthetic Conv2d(1x1) + BatchNorm2d parameters."""
    params = []
    last = in_channel
    for out_channel in mlp:
        key, k1, k2, k3, k4 = jax.random.split(key, 5)
        W = 0.2 * jax.random.normal(k1, (out_channel, last), jnp.float32)
        b_conv = 0.05 * jax.random.normal(k2, (out_channel,), jnp.float32)
        gamma = 1.0 + 0.1 * jax.random.normal(k3, (out_channel,), jnp.float32)
        beta = 0.05 * jax.random.normal(k4, (out_channel,), jnp.float32)
        mean = jnp.zeros((out_channel,), jnp.float32)
        var = jnp.ones((out_channel,), jnp.float32)
        params.append((W, b_conv, gamma, beta, mean, var))
        last = out_channel
    return params


if __name__ == "__main__":
    B, C, N = 2, 3, 16         # points: [B, C, N] (C=3 coordinates)
    radius = 0.6
    nsample = 8
    in_channel = 2 * C         # edge features are [center, neighbor - center]
    mlp = [32, 64]

    key = jax.random.PRNGKey(0)
    kp, kx = jax.random.split(key)
    params = make_params(kp, in_channel, mlp)
    points = jax.random.uniform(kx, (B, C, N), jnp.float32)

    out = relation_encoding_forward(points, params, radius=radius,
                                    nsample=nsample, tm=1024)
    out = jax.block_until_ready(out)
    assert out.shape == (B, mlp[-1], N), out.shape
    out_f32 = out.astype(jnp.float32)

    # Tight check vs a reference that mirrors the intentional bf16 quantization
    # of the rel stream, matmul weights, inter-layer activations and output.
    ref_q = relation_encoding_reference(points, params, radius=radius,
                                        nsample=nsample, quantized=True)
    assert jnp.allclose(out_f32, ref_q, rtol=1e-2, atol=1e-2), (
        float(jnp.max(jnp.abs(out_f32 - ref_q))))

    # Loose check vs the pure-f32 reference (covers all bf16 rounding).
    ref = relation_encoding_reference(points, params, radius=radius,
                                      nsample=nsample, quantized=False)
    assert jnp.allclose(out_f32, ref, rtol=5e-2, atol=5e-2), (
        float(jnp.max(jnp.abs(out_f32 - ref))))

    print("KERNEL_OK")
</pallas_src>

<mosaic_0001>
module attributes {stable_mosaic.version = 11 : i64} {
  func.func @_relation_mlp_kernel(%arg0: i32, %arg1: i32, %arg2: memref<1x3x16xf32, #tpu.memory_space<vmem>>, %arg3: memref<1x8x3x16xbf16, #tpu.memory_space<vmem>>, %arg4: memref<32x3xf32, #tpu.memory_space<vmem>>, %arg5: memref<32x3xbf16, #tpu.memory_space<vmem>>, %arg6: memref<32x1xf32, #tpu.memory_space<vmem>>, %arg7: memref<64x32xbf16, #tpu.memory_space<vmem>>, %arg8: memref<64x1xf32, #tpu.memory_space<vmem>>, %arg9: memref<1x64x16xbf16, #tpu.memory_space<vmem>>, %arg10: memref<32x1024xbf16, #tpu.memory_space<vmem>>) attributes {dimension_semantics = [#tpu.dimension_semantics<parallel>, #tpu.dimension_semantics<parallel>], iteration_bounds = array<i64: 2, 1>, scalar_prefetch = 0 : i64, scratch_operands = 1 : i64, tpu.core_type = #tpu.core_type<tc>, window_params = [{transform_indices = @transform_0, window_bounds = array<i64: 1, 3, 16>}, {transform_indices = @transform_1, window_bounds = array<i64: 1, 8, 3, 16>}, {pipeline_mode = #tpu.pipeline_mode<synchronous>, transform_indices = @transform_2, window_bounds = array<i64: 32, 3>}, {pipeline_mode = #tpu.pipeline_mode<synchronous>, transform_indices = @transform_3, window_bounds = array<i64: 32, 3>}, {pipeline_mode = #tpu.pipeline_mode<synchronous>, transform_indices = @transform_4, window_bounds = array<i64: 32, 1>}, {pipeline_mode = #tpu.pipeline_mode<synchronous>, transform_indices = @transform_5, window_bounds = array<i64: 64, 32>}, {pipeline_mode = #tpu.pipeline_mode<synchronous>, transform_indices = @transform_6, window_bounds = array<i64: 64, 1>}, {transform_indices = @transform_7, window_bounds = array<i64: 1, 64, 16>}]} {
    %c0 = arith.constant 0 : index
    %c0_0 = arith.constant 0 : index
    %0 = vector.load %arg4[%c0, %c0_0] : memref<32x3xf32, #tpu.memory_space<vmem>>, vector<32x3xf32>
    %c0_1 = arith.constant 0 : index
    %c0_2 = arith.constant 0 : index
    %1 = vector.load %arg5[%c0_1, %c0_2] : memref<32x3xbf16, #tpu.memory_space<vmem>>, vector<32x3xbf16>
    %c0_3 = arith.constant 0 : index
    %c0_4 = arith.constant 0 : index
    %2 = vector.load %arg6[%c0_3, %c0_4] : memref<32x1xf32, #tpu.memory_space<vmem>>, vector<32x1xf32>
    %c0_5 = arith.constant 0 : index
    %c0_6 = arith.constant 0 : index
    %3 = vector.load %arg7[%c0_5, %c0_6] : memref<64x32xbf16, #tpu.memory_space<vmem>>, vector<64x32xbf16>
    %c0_7 = arith.constant 0 : index
    %c0_8 = arith.constant 0 : index
    %4 = vector.load %arg8[%c0_7, %c0_8] : memref<64x1xf32, #tpu.memory_space<vmem>>, vector<64x1xf32>
    %cst = arith.constant 0.000000e+00 : bf16
    %5 = vector.broadcast %cst : bf16 to vector<32x1024xbf16>
    %c0_9 = arith.constant 0 : index
    %c0_10 = arith.constant 0 : index
    %6 = vector.load %arg10[%c0_9, %c0_10] : memref<32x1024xbf16, #tpu.memory_space<vmem>>, vector<32x1024xbf16>
    tpu.vector_store %arg10[%c0_9, %c0_10], %5 {strides = array<i32>} : memref<32x1024xbf16, #tpu.memory_space<vmem>>, vector<32x1024xbf16>,
    %c0_11 = arith.constant 0 : index
    %c0_12 = arith.constant 0 : index
    %c0_13 = arith.constant 0 : index
    %7 = vector.load %arg2[%c0_11, %c0_12, %c0_13] : memref<1x3x16xf32, #tpu.memory_space<vmem>>, vector<1x3x16xf32>
    %8 = vector.shape_cast %7 : vector<1x3x16xf32> to vector<3x16xf32>
    %cst_14 = arith.constant dense<0.000000e+00> : vector<32x16xf32>
    %9 = tpu.matmul %0, %8, %cst_14 {dimension_numbers = #tpu.dot_dimension_numbers<[1], [0], [0], [1], [0, 0, 1, 1], [], []>} : vector<32x3xf32>, vector<3x16xf32>, vector<32x16xf32> -> vector<32x16xf32>
    %10 = vector.broadcast %2 : vector<32x1xf32> to vector<32x16xf32>
    %11 = arith.addf %9, %10 : vector<32x16xf32>
    %c0_15 = arith.constant 0 : index
    %c0_16 = arith.constant 0 : index
    %c0_17 = arith.constant 0 : index
    %c0_18 = arith.constant 0 : index
    %12 = vector.load %arg3[%c0_15, %c0_16, %c0_17, %c0_18] : memref<1x8x3x16xbf16, #tpu.memory_space<vmem>>, vector<1x1x3x16xbf16>
    %13 = vector.shape_cast %12 : vector<1x1x3x16xbf16> to vector<3x16xbf16>
    %cst_19 = arith.constant dense<0.000000e+00> : vector<32x16xf32>
    %14 = tpu.matmul %1, %13, %cst_19 {dimension_numbers = #tpu.dot_dimension_numbers<[1], [0], [0], [1], [0, 0, 1, 1], [], []>} : vector<32x3xbf16>, vector<3x16xbf16>, vector<32x16xf32> -> vector<32x16xf32>
    %15 = arith.addf %11, %14 : vector<32x16xf32>
    %cst_20 = arith.constant 2.000000e-01 : f32
    %16 = vector.broadcast %cst_20 : f32 to vector<32x16xf32>
    %17 = arith.mulf %16, %15 : vector<32x16xf32>
    %18 = arith.maximumf %15, %17 : vector<32x16xf32>
    %19 = arith.truncf %18 : vector<32x16xf32> to vector<32x16xbf16>
    %c0_21 = arith.constant 0 : index
    %c0_22 = arith.constant 0 : index
    %20 = vector.load %arg10[%c0_21, %c0_22] : memref<32x1024xbf16, #tpu.memory_space<vmem>>, vector<32x16xbf16>
    tpu.vector_store %arg10[%c0_21, %c0_22], %19 {strides = array<i32>} : memref<32x1024xbf16, #tpu.memory_space<vmem>>, vector<32x16xbf16>,
    %c0_23 = arith.constant 0 : index
    %c1 = arith.constant 1 : index
    %c0_24 = arith.constant 0 : index
    %c0_25 = arith.constant 0 : index
    %21 = vector.load %arg3[%c0_23, %c1, %c0_24, %c0_25] : memref<1x8x3x16xbf16, #tpu.memory_space<vmem>>, vector<1x1x3x16xbf16>
    %22 = vector.shape_cast %21 : vector<1x1x3x16xbf16> to vector<3x16xbf16>
    %cst_26 = arith.constant dense<0.000000e+00> : vector<32x16xf32>
    %23 = tpu.matmul %1, %22, %cst_26 {dimension_numbers = #tpu.dot_dimension_numbers<[1], [0], [0], [1], [0, 0, 1, 1], [], []>} : vector<32x3xbf16>, vector<3x16xbf16>, vector<32x16xf32> -> vector<32x16xf32>
    %24 = arith.addf %11, %23 : vector<32x16xf32>
    %cst_27 = arith.constant 2.000000e-01 : f32
    %25 = vector.broadcast %cst_27 : f32 to vector<32x16xf32>
    %26 = arith.mulf %25, %24 : vector<32x16xf32>
    %27 = arith.maximumf %24, %26 : vector<32x16xf32>
    %28 = arith.truncf %27 : vector<32x16xf32> to vector<32x16xbf16>
    %c0_28 = arith.constant 0 : index
    %c128 = arith.constant 128 : index
    %29 = vector.load %arg10[%c0_28, %c128] : memref<32x1024xbf16, #tpu.memory_space<vmem>>, vector<32x16xbf16>
    tpu.vector_store %arg10[%c0_28, %c128], %28 {strides = array<i32>} : memref<32x1024xbf16, #tpu.memory_space<vmem>>, vector<32x16xbf16>,
    %c0_29 = arith.constant 0 : index
    %c2 = arith.constant 2 : index
    %c0_30 = arith.constant 0 : index
    %c0_31 = arith.constant 0 : index
    %30 = vector.load %arg3[%c0_29, %c2, %c0_30, %c0_31] : memref<1x8x3x16xbf16, #tpu.memory_space<vmem>>, vector<1x1x3x16xbf16>
    %31 = vector.shape_cast %30 : vector<1x1x3x16xbf16> to vector<3x16xbf16>
    %cst_32 = arith.constant dense<0.000000e+00> : vector<32x16xf32>
    %32 = tpu.matmul %1, %31, %cst_32 {dimension_numbers = #tpu.dot_dimension_numbers<[1], [0], [0], [1], [0, 0, 1, 1], [], []>} : vector<32x3xbf16>, vector<3x16xbf16>, vector<32x16xf32> -> vector<32x16xf32>
    %33 = arith.addf %11, %32 : vector<32x16xf32>
    %cst_33 = arith.constant 2.000000e-01 : f32
    %34 = vector.broadcast %cst_33 : f32 to vector<32x16xf32>
    %35 = arith.mulf %34, %33 : vector<32x16xf32>
    %36 = arith.maximumf %33, %35 : vector<32x16xf32>
    %37 = arith.truncf %36 : vector<32x16xf32> to vector<32x16xbf16>
    %c0_34 = arith.constant 0 : index
    %c256 = arith.constant 256 : index
    %38 = vector.load %arg10[%c0_34, %c256] : memref<32x1024xbf16, #tpu.memory_space<vmem>>, vector<32x16xbf16>
    tpu.vector_store %arg10[%c0_34, %c256], %37 {strides = array<i32>} : memref<32x1024xbf16, #tpu.memory_space<vmem>>, vector<32x16xbf16>,
    %c0_35 = arith.constant 0 : index
    %c3 = arith.constant 3 : index
    %c0_36 = arith.constant 0 : index
    %c0_37 = arith.constant 0 : index
    %39 = vector.load %arg3[%c0_35, %c3, %c0_36, %c0_37] : memref<1x8x3x16xbf16, #tpu.memory_space<vmem>>, vector<1x1x3x16xbf16>
    %40 = vector.shape_cast %39 : vector<1x1x3x16xbf16> to vector<3x16xbf16>
    %cst_38 = arith.constant dense<0.000000e+00> : vector<32x16xf32>
    %41 = tpu.matmul %1, %40, %cst_38 {dimension_numbers = #tpu.dot_dimension_numbers<[1], [0], [0], [1], [0, 0, 1, 1], [], []>} : vector<32x3xbf16>, vector<3x16xbf16>, vector<32x16xf32> -> vector<32x16xf32>
    %42 = arith.addf %11, %41 : vector<32x16xf32>
    %cst_39 = arith.constant 2.000000e-01 : f32
    %43 = vector.broadcast %cst_39 : f32 to vector<32x16xf32>
    %44 = arith.mulf %43, %42 : vector<32x16xf32>
    %45 = arith.maximumf %42, %44 : vector<32x16xf32>
    %46 = arith.truncf %45 : vector<32x16xf32> to vector<32x16xbf16>
    %c0_40 = arith.constant 0 : index
    %c384 = arith.constant 384 : index
    %47 = vector.load %arg10[%c0_40, %c384] : memref<32x1024xbf16, #tpu.memory_space<vmem>>, vector<32x16xbf16>
    tpu.vector_store %arg10[%c0_40, %c384], %46 {strides = array<i32>} : memref<32x1024xbf16, #tpu.memory_space<vmem>>, vector<32x16xbf16>,
    %c0_41 = arith.constant 0 : index
    %c4 = arith.constant 4 : index
    %c0_42 = arith.constant 0 : index
    %c0_43 = arith.constant 0 : index
    %48 = vector.load %arg3[%c0_41, %c4, %c0_42, %c0_43] : memref<1x8x3x16xbf16, #tpu.memory_space<vmem>>, vector<1x1x3x16xbf16>
    %49 = vector.shape_cast %48 : vector<1x1x3x16xbf16> to vector<3x16xbf16>
    %cst_44 = arith.constant dense<0.000000e+00> : vector<32x16xf32>
    %50 = tpu.matmul %1, %49, %cst_44 {dimension_numbers = #tpu.dot_dimension_numbers<[1], [0], [0], [1], [0, 0, 1, 1], [], []>} : vector<32x3xbf16>, vector<3x16xbf16>, vector<32x16xf32> -> vector<32x16xf32>
    %51 = arith.addf %11, %50 : vector<32x16xf32>
    %cst_45 = arith.constant 2.000000e-01 : f32
    %52 = vector.broadcast %cst_45 : f32 to vector<32x16xf32>
    %53 = arith.mulf %52, %51 : vector<32x16xf32>
    %54 = arith.maximumf %51, %53 : vector<32x16xf32>
    %55 = arith.truncf %54 : vector<32x16xf32> to vector<32x16xbf16>
    %c0_46 = arith.constant 0 : index
    %c512 = arith.constant 512 : index
    %56 = vector.load %arg10[%c0_46, %c512] : memref<32x1024xbf16, #tpu.memory_space<vmem>>, vector<32x16xbf16>
    tpu.vector_store %arg10[%c0_46, %c512], %55 {strides = array<i32>} : memref<32x1024xbf16, #tpu.memory_space<vmem>>, vector<32x16xbf16>,
    %c0_47 = arith.constant 0 : index
    %c5 = arith.constant 5 : index
    %c0_48 = arith.constant 0 : index
    %c0_49 = arith.constant 0 : index
    %57 = vector.load %arg3[%c0_47, %c5, %c0_48, %c0_49] : memref<1x8x3x16xbf16, #tpu.memory_space<vmem>>, vector<1x1x3x16xbf16>
    %58 = vector.shape_cast %57 : vector<1x1x3x16xbf16> to vector<3x16xbf16>
    %cst_50 = arith.constant dense<0.000000e+00> : vector<32x16xf32>
    %59 = tpu.matmul %1, %58, %cst_50 {dimension_numbers = #tpu.dot_dimension_numbers<[1], [0], [0], [1], [0, 0, 1, 1], [], []>} : vector<32x3xbf16>, vector<3x16xbf16>, vector<32x16xf32> -> vector<32x16xf32>
    %60 = arith.addf %11, %59 : vector<32x16xf32>
    %cst_51 = arith.constant 2.000000e-01 : f32
    %61 = vector.broadcast %cst_51 : f32 to vector<32x16xf32>
    %62 = arith.mulf %61, %60 : vector<32x16xf32>
    %63 = arith.maximumf %60, %62 : vector<32x16xf32>
    %64 = arith.truncf %63 : vector<32x16xf32> to vector<32x16xbf16>
    %c0_52 = arith.constant 0 : index
    %c640 = arith.constant 640 : index
    %65 = vector.load %arg10[%c0_52, %c640] : memref<32x1024xbf16, #tpu.memory_space<vmem>>, vector<32x16xbf16>
    tpu.vector_store %arg10[%c0_52, %c640], %64 {strides = array<i32>} : memref<32x1024xbf16, #tpu.memory_space<vmem>>, vector<32x16xbf16>,
    %c0_53 = arith.constant 0 : index
    %c6 = arith.constant 6 : index
    %c0_54 = arith.constant 0 : index
    %c0_55 = arith.constant 0 : index
    %66 = vector.load %arg3[%c0_53, %c6, %c0_54, %c0_55] : memref<1x8x3x16xbf16, #tpu.memory_space<vmem>>, vector<1x1x3x16xbf16>
    %67 = vector.shape_cast %66 : vector<1x1x3x16xbf16> to vector<3x16xbf16>
    %cst_56 = arith.constant dense<0.000000e+00> : vector<32x16xf32>
    %68 = tpu.matmul %1, %67, %cst_56 {dimension_numbers = #tpu.dot_dimension_numbers<[1], [0], [0], [1], [0, 0, 1, 1], [], []>} : vector<32x3xbf16>, vector<3x16xbf16>, vector<32x16xf32> -> vector<32x16xf32>
    %69 = arith.addf %11, %68 : vector<32x16xf32>
    %cst_57 = arith.constant 2.000000e-01 : f32
    %70 = vector.broadcast %cst_57 : f32 to vector<32x16xf32>
    %71 = arith.mulf %70, %69 : vector<32x16xf32>
    %72 = arith.maximumf %69, %71 : vector<32x16xf32>
    %73 = arith.truncf %72 : vector<32x16xf32> to vector<32x16xbf16>
    %c0_58 = arith.constant 0 : index
    %c768 = arith.constant 768 : index
    %74 = vector.load %arg10[%c0_58, %c768] : memref<32x1024xbf16, #tpu.memory_space<vmem>>, vector<32x16xbf16>
    tpu.vector_store %arg10[%c0_58, %c768], %73 {strides = array<i32>} : memref<32x1024xbf16, #tpu.memory_space<vmem>>, vector<32x16xbf16>,
    %c0_59 = arith.constant 0 : index
    %c7 = arith.constant 7 : index
    %c0_60 = arith.constant 0 : index
    %c0_61 = arith.constant 0 : index
    %75 = vector.load %arg3[%c0_59, %c7, %c0_60, %c0_61] : memref<1x8x3x16xbf16, #tpu.memory_space<vmem>>, vector<1x1x3x16xbf16>
    %76 = vector.shape_cast %75 : vector<1x1x3x16xbf16> to vector<3x16xbf16>
    %cst_62 = arith.constant dense<0.000000e+00> : vector<32x16xf32>
    %77 = tpu.matmul %1, %76, %cst_62 {dimension_numbers = #tpu.dot_dimension_numbers<[1], [0], [0], [1], [0, 0, 1, 1], [], []>} : vector<32x3xbf16>, vector<3x16xbf16>, vector<32x16xf32> -> vector<32x16xf32>
    %78 = arith.addf %11, %77 : vector<32x16xf32>
    %cst_63 = arith.constant 2.000000e-01 : f32
    %79 = vector.broadcast %cst_63 : f32 to vector<32x16xf32>
    %80 = arith.mulf %79, %78 : vector<32x16xf32>
    %81 = arith.maximumf %78, %80 : vector<32x16xf32>
    %82 = arith.truncf %81 : vector<32x16xf32> to vector<32x16xbf16>
    %c0_64 = arith.constant 0 : index
    %c896 = arith.constant 896 : index
    %83 = vector.load %arg10[%c0_64, %c896] : memref<32x1024xbf16, #tpu.memory_space<vmem>>, vector<32x16xbf16>
    tpu.vector_store %arg10[%c0_64, %c896], %82 {strides = array<i32>} : memref<32x1024xbf16, #tpu.memory_space<vmem>>, vector<32x16xbf16>,
    %c0_65 = arith.constant 0 : index
    %c0_66 = arith.constant 0 : index
    %84 = vector.load %arg10[%c0_65, %c0_66] : memref<32x1024xbf16, #tpu.memory_space<vmem>>, vector<32x1024xbf16>
    %cst_67 = arith.constant dense<0.000000e+00> : vector<64x1024xf32>
    %85 = tpu.matmul %3, %84, %cst_67 {dimension_numbers = #tpu.dot_dimension_numbers<[1], [0], [0], [1], [0, 0, 1, 1], [], []>} : vector<64x32xbf16>, vector<32x1024xbf16>, vector<64x1024xf32> -> vector<64x1024xf32>
    %86 = vector.broadcast %4 : vector<64x1xf32> to vector<64x1024xf32>
    %87 = arith.addf %85, %86 : vector<64x1024xf32>
    %cst_68 = arith.constant 2.000000e-01 : f32
    %88 = vector.broadcast %cst_68 : f32 to vector<64x1024xf32>
    %89 = arith.mulf %88, %87 : vector<64x1024xf32>
    %90 = arith.maximumf %87, %89 : vector<64x1024xf32>
    %91 = vector.extract_strided_slice %90 {offsets = [0, 0], sizes = [64, 16], strides = [1, 1]} : vector<64x1024xf32> to vector<64x16xf32>
    %92 = vector.extract_strided_slice %90 {offsets = [0, 128], sizes = [64, 16], strides = [1, 1]} : vector<64x1024xf32> to vector<64x16xf32>
    %93 = arith.maximumf %91, %92 : vector<64x16xf32>
    %94 = vector.extract_strided_slice %90 {offsets = [0, 256], sizes = [64, 16], strides = [1, 1]} : vector<64x1024xf32> to vector<64x16xf32>
    %95 = arith.maximumf %93, %94 : vector<64x16xf32>
    %96 = vector.extract_strided_slice %90 {offsets = [0, 384], sizes = [64, 16], strides = [1, 1]} : vector<64x1024xf32> to vector<64x16xf32>
    %97 = arith.maximumf %95, %96 : vector<64x16xf32>
    %98 = vector.extract_strided_slice %90 {offsets = [0, 512], sizes = [64, 16], strides = [1, 1]} : vector<64x1024xf32> to vector<64x16xf32>
    %99 = arith.maximumf %97, %98 : vector<64x16xf32>
    %100 = vector.extract_strided_slice %90 {offsets = [0, 640], sizes = [64, 16], strides = [1, 1]} : vector<64x1024xf32> to vector<64x16xf32>
    %101 = arith.maximumf %99, %100 : vector<64x16xf32>
    %102 = vector.extract_strided_slice %90 {offsets = [0, 768], sizes = [64, 16], strides = [1, 1]} : vector<64x1024xf32> to vector<64x16xf32>
    %103 = arith.maximumf %101, %102 : vector<64x16xf32>
    %104 = vector.extract_strided_slice %90 {offsets = [0, 896], sizes = [64, 16], strides = [1, 1]} : vector<64x1024xf32> to vector<64x16xf32>
    %105 = arith.maximumf %103, %104 : vector<64x16xf32>
    %106 = arith.truncf %105 : vector<64x16xf32> to vector<64x16xbf16>
    %c0_69 = arith.constant 0 : index
    %c0_70 = arith.constant 0 : index
    %c0_71 = arith.constant 0 : index
    %107 = vector.load %arg9[%c0_69, %c0_70, %c0_71] : memref<1x64x16xbf16, #tpu.memory_space<vmem>>, vector<1x64x16xbf16>
    %108 = vector.shape_cast %107 : vector<1x64x16xbf16> to vector<64x16xbf16>
    %109 = vector.shape_cast %106 : vector<64x16xbf16> to vector<1x64x16xbf16>
    tpu.vector_store %arg9[%c0_69, %c0_70, %c0_71], %109 {strides = array<i32>} : memref<1x64x16xbf16, #tpu.memory_space<vmem>>, vector<1x64x16xbf16>,
    return
  }
  func.func @transform_0(%arg0: i32, %arg1: i32) -> (i32, i32, i32) {
    %c0_i32 = arith.constant 0 : i32
    %c0_i32_0 = arith.constant 0 : i32
    return %arg0, %c0_i32, %arg1 : i32, i32, i32
  }
  func.func @transform_1(%arg0: i32, %arg1: i32) -> (i32, i32, i32, i32) {
    %c0_i32 = arith.constant 0 : i32
    %c0_i32_0 = arith.constant 0 : i32
    %c0_i32_1 = arith.constant 0 : i32
    return %arg0, %c0_i32, %c0_i32_0, %arg1 : i32, i32, i32, i32
  }
  func.func @transform_2(%arg0: i32, %arg1: i32) -> (i32, i32) {
    %c0_i32 = arith.constant 0 : i32
    %c0_i32_0 = arith.constant 0 : i32
    %c0_i32_1 = arith.constant 0 : i32
    return %c0_i32, %c0_i32_0 : i32, i32
  }
  func.func @transform_3(%arg0: i32, %arg1: i32) -> (i32, i32) {
    %c0_i32 = arith.constant 0 : i32
    %c0_i32_0 = arith.constant 0 : i32
    %c0_i32_1 = arith.constant 0 : i32
    return %c0_i32, %c0_i32_0 : i32, i32
  }
  func.func @transform_4(%arg0: i32, %arg1: i32) -> (i32, i32) {
    %c0_i32 = arith.constant 0 : i32
    %c0_i32_0 = arith.constant 0 : i32
    %c0_i32_1 = arith.constant 0 : i32
    return %c0_i32, %c0_i32_0 : i32, i32
  }
  func.func @transform_5(%arg0: i32, %arg1: i32) -> (i32, i32) {
    %c0_i32 = arith.constant 0 : i32
    %c0_i32_0 = arith.constant 0 : i32
    %c0_i32_1 = arith.constant 0 : i32
    return %c0_i32, %c0_i32_0 : i32, i32
  }
  func.func @transform_6(%arg0: i32, %arg1: i32) -> (i32, i32) {
    %c0_i32 = arith.constant 0 : i32
    %c0_i32_0 = arith.constant 0 : i32
    %c0_i32_1 = arith.constant 0 : i32
    return %c0_i32, %c0_i32_0 : i32, i32
  }
  func.func @transform_7(%arg0: i32, %arg1: i32) -> (i32, i32, i32) {
    %c0_i32 = arith.constant 0 : i32
    %c0_i32_0 = arith.constant 0 : i32
    return %arg0, %c0_i32, %arg1 : i32, i32, i32
  }
}

</mosaic_0001>

<bundles_post_ra>
// kernel: tpu_custom_call.1
= control target key start
LH: loop header
LB: loop body
LE: loop exit
PB: predicated region body
PF: predicated region fallthrough
CT: control target
= control target key end

     0   :  { %s2344_s24 = smov 0   ;;  %s2346_s25 = smov 0   ;;  %s2763_s0 = inlined_call_operand.vmem [shape: f32[2,3,16], index: 0, kind: input, shape index: {}]   ;;  %s2764_s1 = inlined_call_operand.vmem [shape: bf16[2,8,3,16], index: 1, kind: input, shape index: {}]   ;;  %s2765_s2 = inlined_call_operand.vmem [shape: f32[32,3], index: 2, kind: input, shape index: {}]   ;;  %s2766_s3 = inlined_call_operand.vmem [shape: bf16[32,3], index: 3, kind: input, shape index: {}]   ;;  %s2767_s4 = inlined_call_operand.vmem [shape: f32[32,1], index: 4, kind: input, shape index: {}]   ;;  %s2768_s5 = inlined_call_operand.vmem [shape: bf16[64,32], index: 5, kind: input, shape index: {}]   ;;  %s2769_s6 = inlined_call_operand.vmem [shape: f32[64,1], index: 6, kind: input, shape index: {}]   ;;  %s2770_s7 = inlined_call_operand.vmem [shape: bf16[2,64,16], index: 7, kind: output, shape index: {}]  }
   0x1   :  { %s2348_s26 = smov 0  }
   0x2 LB: > { %s29_s27 = sadd.s32 1, %s2296_s25  ;;  %p2001_p0 = scmp.ge.s32.totalorder %s2300_s26, 1  ;;  %s2300_s26 = sphi %s2348_s26, %s17_s26   ;;  %s2296_s25 = sphi %s2346_s25, %s2772_s25   ;;  %s2292_s24 = sphi %s2344_s24, %s2771_s24  }
   0x3   : > { %p31_p1 = scmp.ge.s32.totalorder %s29_s27, 2  ;;  %p270_p2 = scmp.lt.s32.totalorder %s2300_s26, 3 }
   0x5   : > { %s2774_s27 = smov (%p31_p1, %s29_s27), 0  ;;  %p271_p3 = pnand %p2001_p0, %p270_p2 }
   0x6   : > { %p315_p4 = scmp.lt.s32.totalorder (!%p271_p3), %s2292_s24, 1 }
   0x7   : > { %274 = sbr.rel (%p271_p3) target bundleno = 528 (0x210), region = 48 }
   0xc   : > { %v339_v0 = vld [vmem:[%s2765_s2] sm:$0xff]  ;;  %vm404_vm0 = vcmask 23552   ;;  %v341_v1 = vld [vmem:[%s2765_s2 + $0x10] sm:$0xff]  ;;  %vm523_vm1 = vcmask 1040384   ;;  %vm524_vm2 = vcmask 1041408   ;;  %s2776_s24 = smov (!%p315_p4, %s2292_s24), 1 }
   0xd   : > { %2188 = vmatprep.mubr.msk.f32.mxu0 %vm404_vm0, %v339_v0  ;;  %2191 = vmatprep.mubr.msk.f32.mxu1 %vm404_vm0, %v341_v1  ;;  %v2302_v2 = vmov 65535   ;;  %s2002_s9 = sshll.u32 %s2776_s24, 2  ;;  %s2115_s10 = sshll.u32 %s2776_s24, 4  ;;  %vm417_vm3 = vcmask 1042432   ;;  %v2303_v5 = vmov 0   ;;  %v349_v6 = vld [vmem:[%s2767_s4 + $0x10] sm:$0xff] }
   0xe   : > { %v525_v3 = vsel %vm523_vm1, 4294967295, %v2302_v2  ;;  %2270 = vset.pattern.permute.xlu0 %v2303_v5  ;;  %367 = vst [vmem:[#allocation2] sm:$0xff] %v2303_v5  ;;  %368 = vst [vmem:[#allocation2 + $0x8] sm:$0xff] %v2303_v5  ;;  %2271 = vset.pattern.permute.xlu1 %v2303_v5  ;;  %v347_v7 = vld [vmem:[%s2767_s4] sm:$0xff]  ;;  %s321_s17 = scalar_lea.vmem %s2763_s0, %s2002_s9  ;;  %s2406_s20 = scalar_lea.vmem %s2764_s1, %s2115_s10  ;;  %v340_v8 = vld [vmem:[%s2765_s2 + $0x8] sm:$0xff]  ;;  %vm607_vm4 = vcmask 125952  }
   0xf   : > { %v2374_v4 = vsel %vm524_vm2, %v525_v3, 0  ;;  %369 = vst [vmem:[#allocation2 + $0x10] sm:$0xff] %v2303_v5  ;;  %370 = vst [vmem:[#allocation2 + $0x18] sm:$0xff] %v2303_v5  ;;  %396 = vperm.xlu0 %2270, %v349_v6   ;;  %386 = vperm.xlu1 %2271, %v347_v7   ;;  %v383_v9 = vld [vmem:[%s321_s17] sm:$0x7]  ;;  %v342_v10 = vld [vmem:[%s2765_s2 + $0x18] sm:$0xff] }
  0x10   : > { %371 = vst [vmem:[#allocation2 + $0x20] sm:$0xff] %v2303_v5  ;;  %372 = vst [vmem:[#allocation2 + $0x28] sm:$0xff] %v2303_v5  ;;  %v506_v11 = vld [vmem:[%s2406_s20] sm:$0x3]  ;;  %2186 = vmatprep.subr.msk.mxu0 %vm417_vm3, %v383_v9  ;;  %2242 = vmatprep.subr.msk.mxu1 %vm417_vm3, %v383_v9  ;;  %v2020_v13 = vld [vmem:[%s2406_s20 + $0x2] sm:$0x3] }
  0x11   : > { %373 = vst [vmem:[#allocation2 + $0x30] sm:$0xff] %v2303_v5  ;;  %374 = vst [vmem:[#allocation2 + $0x38] sm:$0xff] %v2303_v5  ;;  %v528_v12 = vand.u32 %v2374_v4, %v506_v11  ;;  %v2027_v14 = vld [vmem:[%s2406_s20 + $0x4] sm:$0x3]  ;;  %v2034_v15 = vld [vmem:[%s2406_s20 + $0x6] sm:$0x3]  ;;  %2187 = vmatpush3.msk.msra.mxu0 %vm417_vm3, %v383_v9  ;;  %2243 = vmatpush3.msk.msra.mxu1 %vm417_vm3, %v383_v9  ;;  %v615_v16 = vand.u32 %v2020_v13, %v2374_v4 }
  0x12   : > { %375 = vst [vmem:[#allocation2 + $0x40] sm:$0xff] %v2303_v5  ;;  %376 = vst [vmem:[#allocation2 + $0x48] sm:$0xff] %v2303_v5  ;;  %v2272_v17 = vld [vmem:[%s2766_s3] sm:$0xff]   ;;  %2189 = vmatmul.mubr.msk.f32.vlgmr.msra.gmra.mxu0 %vm404_vm0, %v340_v8  ;;  %2192 = vmatmul.mubr.msk.f32.vlgmr.msra.gmra.mxu1 %vm404_vm0, %v342_v10  ;;  %v701_v18 = vand.u32 %v2027_v14, %v2374_v4  ;;  %v787_v19 = vand.u32 %v2034_v15, %v2374_v4  ;;  %v2273_v20 = vld [vmem:[%s2766_s3 + $0x8] sm:$0xff]   ;;  %vm1370_vm5 = vcmask 261120   ;;  %s2116_s19 = sshll.u32 %s2776_s24, 5 }
  0x13   : > { %377 = vst [vmem:[#allocation2 + $0x50] sm:$0xff] %v2303_v5  ;;  %378 = vst [vmem:[#allocation2 + $0x58] sm:$0xff] %v2303_v5  ;;  %2194 = vmatprep.subr.bf16.mxu1 %v528_v12  ;;  %2200 = vmatprep.subr.bf16.mxu0 %v615_v16  ;;  %v2041_v21 = vld [vmem:[%s2406_s20 + $0x8] sm:$0x3]  ;;  %v2048_v22 = vld [vmem:[%s2406_s20 + $0xa] sm:$0x3]  ;;  %s2710_s24 = scalar_lea.vmem %s2770_s7, %s2116_s19 }
  0x14   : > { %379 = vst [vmem:[#allocation2 + $0x60] sm:$0xff] %v2303_v5  ;;  %380 = vst [vmem:[#allocation2 + $0x68] sm:$0xff] %v2303_v5  ;;  %2195 = vmatpush3.bf16.msra.mxu1 %v528_v12  ;;  %2201 = vmatpush3.bf16.msra.mxu0 %v615_v16  ;;  %v873_v23 = vand.u32 %v2041_v21, %v2374_v4  ;;  %v959_v24 = vand.u32 %v2048_v22, %v2374_v4  ;;  %v350_v25 = vld [vmem:[%s2767_s4 + $0x18] sm:$0xff]  ;;  %v348_v26 = vld [vmem:[%s2767_s4 + $0x8] sm:$0xff] }
  0x15   : > { %381 = vst [vmem:[#allocation2 + $0x70] sm:$0xff] %v2303_v5  ;;  %382 = vst [vmem:[#allocation2 + $0x78] sm:$0xff] %v2303_v5  ;;  %2196 = vmatprep.mubr.msk.bf16.mxu1 %vm404_vm0, %v2272_v17  ;;  %2202 = vmatprep.mubr.msk.bf16.mxu0 %vm404_vm0, %v2272_v17  ;;  %v2055_v27 = vld [vmem:[%s2406_s20 + $0xc] sm:$0x3]  ;;  %v2062_v28 = vld [vmem:[%s2406_s20 + $0xe] sm:$0x3] }
  0x16   : > { %2206 = vmatprep.subr.bf16.mxu1 %v701_v18  ;;  %2212 = vmatprep.subr.bf16.mxu0 %v787_v19  ;;  %v1045_v29 = vand.u32 %v2055_v27, %v2374_v4  ;;  %v1131_v30 = vand.u32 %v2062_v28, %v2374_v4  ;;  %v359_v31 = vld [vmem:[%s2769_s6] sm:$0xff]  ;;  %v360_v32 = vld [vmem:[%s2769_s6 + $0x8] sm:$0xff]  ;;  %v361_v33 = vld [vmem:[%s2769_s6 + $0x10] sm:$0xff] }
  0x17   : > { %2197 = vmatmul.mubr.msk.bf16.vlgmr.msra.gmra.mxu1 %vm404_vm0, %v2273_v20  ;;  %2203 = vmatmul.mubr.msk.bf16.vlgmr.msra.gmra.mxu0 %vm404_vm0, %v2273_v20  ;;  %v362_v34 = vld [vmem:[%s2769_s6 + $0x18] sm:$0xff]  ;;  %v363_v35 = vld [vmem:[%s2769_s6 + $0x20] sm:$0xff]  ;;  %v364_v36 = vld [vmem:[%s2769_s6 + $0x28] sm:$0xff] }
  0x18   : > { %2207 = vmatpush3.bf16.msra.mxu1 %v701_v18  ;;  %2213 = vmatpush3.bf16.msra.mxu0 %v787_v19  ;;  %v365_v37 = vld [vmem:[%s2769_s6 + $0x30] sm:$0xff]  ;;  %v366_v38 = vld [vmem:[%s2769_s6 + $0x38] sm:$0xff] }
  0x19   : > { %2208 = vmatprep.mubr.msk.bf16.mxu1 %vm404_vm0, %v2272_v17  ;;  %2214 = vmatprep.mubr.msk.bf16.mxu0 %vm404_vm0, %v2272_v17 }
  0x1a   : > { %2218 = vmatprep.subr.bf16.mxu1 %v873_v23  ;;  %2224 = vmatprep.subr.bf16.mxu0 %v959_v24 }
  0x1b   : > { %401 = vperm.xlu0 %2270, %v350_v25   ;;  %391 = vperm.xlu1 %2271, %v348_v26  }
  0x1f   : > { %2209 = vmatmul.mubr.msk.bf16.vlgmr.msra.gmra.mxu1 %vm404_vm0, %v2273_v20  ;;  %2215 = vmatmul.mubr.msk.bf16.vlgmr.msra.gmra.mxu0 %vm404_vm0, %v2273_v20 }
  0x20   : > { %2219 = vmatpush3.bf16.msra.mxu1 %v873_v23  ;;  %2225 = vmatpush3.bf16.msra.mxu0 %v959_v24 }
  0x21   : > { %2220 = vmatprep.mubr.msk.bf16.mxu1 %vm404_vm0, %v2272_v17  ;;  %2226 = vmatprep.mubr.msk.bf16.mxu0 %vm404_vm0, %v2272_v17 }
  0x22   : > { %2230 = vmatprep.subr.bf16.mxu1 %v1045_v29  ;;  %2236 = vmatprep.subr.bf16.mxu0 %v1131_v30 }
  0x23   : > { %1232 = vperm.xlu0 %2270, %v359_v31   ;;  %1237 = vperm.xlu1 %2271, %v360_v32  }
  0x27   : > { %2221 = vmatmul.mubr.msk.bf16.vlgmr.msra.gmra.mxu1 %vm404_vm0, %v2273_v20  ;;  %2227 = vmatmul.mubr.msk.bf16.vlgmr.msra.gmra.mxu0 %vm404_vm0, %v2273_v20 }
  0x28   : > { %2231 = vmatpush3.bf16.msra.mxu1 %v1045_v29  ;;  %2237 = vmatpush3.bf16.msra.mxu0 %v1131_v30 }
  0x29   : > { %2232 = vmatprep.mubr.msk.bf16.mxu1 %vm404_vm0, %v2272_v17  ;;  %2238 = vmatprep.mubr.msk.bf16.mxu0 %vm404_vm0, %v2272_v17 }
  0x2a   : > { %1242 = vperm.xlu0 %2270, %v361_v33   ;;  %1247 = vperm.xlu1 %2271, %v362_v34  }
  0x2e   : > { %1252 = vperm.xlu0 %2270, %v363_v35   ;;  %1257 = vperm.xlu1 %2271, %v364_v36  }
  0x2f   : > { %2233 = vmatmul.mubr.msk.bf16.vlgmr.msra.gmra.mxu1 %vm404_vm0, %v2273_v20  ;;  %2239 = vmatmul.mubr.msk.bf16.vlgmr.msra.gmra.mxu0 %vm404_vm0, %v2273_v20 }
  0x30   : > { %1415 = vmatprep.mubr.bf16.mxu1 %v2303_v5  ;;  %1488 = vmatprep.mubr.bf16.mxu0 %v2303_v5 }
  0x32   : > { %1262 = vperm.xlu0 %2270, %v365_v37   ;;  %1267 = vperm.xlu1 %2271, %v366_v38  }
  0x8a   : > { %v397_v41 = vpop.permute.xlu0 %396  ;;  %v387_v45 = vpop.permute.xlu1 %386 }
  0x96   : > { %v402_v53 = vpop.permute.xlu0 %401  ;;  %v392_v61 = vpop.permute.xlu1 %391 }
  0xd2   : > { %v2190_v39 = vpop.f32.mrf.mxu0  ;;  %v2193_v40 = vpop.f32.mrf.mxu1 }
  0xd3   : > { %v2498_v58 = vadd.f32 %v2193_v40, %v402_v53  ;;  %v2500_v2 = vadd.f32 %v2190_v39, %v392_v61 }
  0xd4   : > { %v487_v42 = vpop.f32.mrf.mxu0  ;;  %v497_v43 = vpop.f32.mrf.mxu1 }
  0xd5   : > { %v2490_v44 = vadd.f32 %v497_v43, %v397_v41  ;;  %v2492_v48 = vadd.f32 %v487_v42, %v387_v45 }
  0xd7   : > { %v2198_v46 = vpop.f32.mrf.mxu1  ;;  %v2204_v47 = vpop.f32.mrf.mxu0 }
  0xd8   : > { %v581_v49 = vadd.f32 %v2198_v46, %v2490_v44  ;;  %v668_v50 = vadd.f32 %v2204_v47, %v2490_v44 }
  0xd9   : > { %v564_v51 = vpop.f32.mrf.mxu1  ;;  %v651_v52 = vpop.f32.mrf.mxu0 }
  0xda   : > { %v585_v54 = vmul.f32 0.2, %v581_v49  ;;  %v672_v55 = vmul.f32 0.2, %v668_v50  ;;  %v579_v56 = vadd.f32 %v564_v51, %v2492_v48  ;;  %v666_v57 = vadd.f32 %v651_v52, %v2492_v48 }
  0xdb   : > { %v2199_v59 = vpop.f32.mrf.mxu1  ;;  %v2205_v60 = vpop.f32.mrf.mxu0 }
  0xdc   : > { %v589_v62 = vmax.f32 %v581_v49, %v585_v54  ;;  %v676_v63 = vmax.f32 %v668_v50, %v672_v55  ;;  %v583_v0 = vmul.f32 0.2, %v579_v56  ;;  %v670_v1 = vmul.f32 0.2, %v666_v57 }
  0xdd   : > { %v582_v3 = vadd.f32 %v2199_v59, %v2498_v58  ;;  %v669_v4 = vadd.f32 %v2205_v60, %v2498_v58  ;;  %v567_v6 = vpop.f32.mrf.mxu1  ;;  %v654_v7 = vpop.f32.mrf.mxu0 }
  0xde   : > { %v2119_v8 = vpack.c.bf16 %v589_v62, %v589_v62  ;;  %v2123_v9 = vpack.c.bf16 %v676_v63, %v676_v63  ;;  %v587_v10 = vmax.f32 %v579_v56, %v583_v0  ;;  %v674_v11 = vmax.f32 %v666_v57, %v670_v1 }
  0xdf   : > { %v586_v12 = vmul.f32 0.2, %v582_v3  ;;  %v673_v13 = vmul.f32 0.2, %v669_v4  ;;  %v580_v14 = vadd.f32 %v567_v6, %v2500_v2  ;;  %v667_v15 = vadd.f32 %v654_v7, %v2500_v2  ;;  %v2210_v16 = vpop.f32.mrf.mxu1  ;;  %v2216_v17 = vpop.f32.mrf.mxu0 }
  0xe0   : > { %610 = vst.msk [vmem:[#allocation2 + $0x40] sm:$0xf] %vm607_vm4, %v2119_v8  ;;  %696 = vst.msk [vmem:[#allocation2 + $0x44] sm:$0xf] %vm607_vm4, %v2123_v9  ;;  %v2117_v18 = vpack.c.bf16 %v587_v10, %v587_v10  ;;  %v2121_v19 = vpack.c.bf16 %v674_v11, %v674_v11  ;;  %v754_v20 = vadd.f32 %v2210_v16, %v2490_v44 }
  0xe1   : > { %v840_v21 = vadd.f32 %v2216_v17, %v2490_v44  ;;  %v590_v22 = vmax.f32 %v582_v3, %v586_v12  ;;  %v677_v23 = vmax.f32 %v669_v4, %v673_v13  ;;  %v584_v24 = vmul.f32 0.2, %v580_v14  ;;  %v737_v26 = vpop.f32.mrf.mxu1  ;;  %v823_v27 = vpop.f32.mrf.mxu0 }
  0xe2   : > { %v671_v25 = vmul.f32 0.2, %v667_v15  ;;  %608 = vst.msk [vmem:[#allocation2] sm:$0xf] %vm607_vm4, %v2117_v18  ;;  %694 = vst.msk [vmem:[#allocation2 + $0x4] sm:$0xf] %vm607_vm4, %v2121_v19  ;;  %v752_v30 = vadd.f32 %v737_v26, %v2492_v48  ;;  %v838_v31 = vadd.f32 %v823_v27, %v2492_v48 }
  0xe3   : > { %v758_v28 = vmul.f32 0.2, %v754_v20  ;;  %v844_v29 = vmul.f32 0.2, %v840_v21  ;;  %v2120_v32 = vpack.c.bf16 %v590_v22, %v590_v22  ;;  %v2124_v33 = vpack.c.bf16 %v677_v23, %v677_v23  ;;  %v2211_v36 = vpop.f32.mrf.mxu1  ;;  %v2217_v37 = vpop.f32.mrf.mxu0 }
  0xe4   : > { %v588_v34 = vmax.f32 %v580_v14, %v584_v24  ;;  %v675_v35 = vmax.f32 %v667_v15, %v671_v25  ;;  %v756_v40 = vmul.f32 0.2, %v752_v30  ;;  %v842_v41 = vmul.f32 0.2, %v838_v31 }
  0xe5   : > { %v762_v38 = vmax.f32 %v754_v20, %v758_v28  ;;  %v848_v39 = vmax.f32 %v840_v21, %v844_v29  ;;  %611 = vst.msk [vmem:[#allocation2 + $0x60] sm:$0xf] %vm607_vm4, %v2120_v32  ;;  %697 = vst.msk [vmem:[#allocation2 + $0x64] sm:$0xf] %vm607_vm4, %v2124_v33  ;;  %v755_v45 = vadd.f32 %v2211_v36, %v2498_v58  ;;  %v740_v47 = vpop.f32.mrf.mxu1  ;;  %v826_v49 = vpop.f32.mrf.mxu0 }
  0xe6   : > { %v2118_v42 = vpack.c.bf16 %v588_v34, %v588_v34  ;;  %v2122_v43 = vpack.c.bf16 %v675_v35, %v675_v35  ;;  %v841_v46 = vadd.f32 %v2217_v37, %v2498_v58  ;;  %v760_v52 = vmax.f32 %v752_v30, %v756_v40 }
  0xe7   : > { %v2127_v50 = vpack.c.bf16 %v762_v38, %v762_v38  ;;  %v2131_v51 = vpack.c.bf16 %v848_v39, %v848_v39  ;;  %v846_v53 = vmax.f32 %v838_v31, %v842_v41  ;;  %v759_v54 = vmul.f32 0.2, %v755_v45  ;;  %v2222_v59 = vpop.f32.mrf.mxu1  ;;  %v2228_v60 = vpop.f32.mrf.mxu0  ;;  %v1222_v38 = vld [vmem:[#allocation2 + $0x40] sm:$0xff] }
  0xe8   : > { %609 = vst.msk [vmem:[#allocation2 + $0x20] sm:$0xf] %vm607_vm4, %v2118_v42  ;;  %695 = vst.msk [vmem:[#allocation2 + $0x24] sm:$0xf] %vm607_vm4, %v2122_v43  ;;  %v845_v55 = vmul.f32 0.2, %v841_v46  ;;  %v753_v56 = vadd.f32 %v740_v47, %v2500_v2  ;;  %v839_v57 = vadd.f32 %v826_v49, %v2500_v2  ;;  %v2125_v61 = vpack.c.bf16 %v760_v52, %v760_v52 }
  0xe9   : > { %782 = vst.msk [vmem:[#allocation2 + $0x48] sm:$0xf] %vm607_vm4, %v2127_v50  ;;  %868 = vst.msk [vmem:[#allocation2 + $0x4c] sm:$0xf] %vm607_vm4, %v2131_v51  ;;  %v2129_v62 = vpack.c.bf16 %v846_v53, %v846_v53  ;;  %v926_v63 = vadd.f32 %v2222_v59, %v2490_v44  ;;  %v1012_v0 = vadd.f32 %v2228_v60, %v2490_v44  ;;  %v909_v7 = vpop.f32.mrf.mxu1  ;;  %v995_v8 = vpop.f32.mrf.mxu0  ;;  %v1214_v52 = vld [vmem:[#allocation2] sm:$0xff] }
  0xea   : > { %v763_v1 = vmax.f32 %v755_v45, %v759_v54  ;;  %v849_v3 = vmax.f32 %v841_v46, %v845_v55  ;;  %v757_v4 = vmul.f32 0.2, %v753_v56  ;;  %v843_v6 = vmul.f32 0.2, %v839_v57  ;;  %780 = vst.msk [vmem:[#allocation2 + $0x8] sm:$0xf] %vm607_vm4, %v2125_v61 }
  0xeb   : > { %866 = vst.msk [vmem:[#allocation2 + $0xc] sm:$0xf] %vm607_vm4, %v2129_v62  ;;  %v930_v9 = vmul.f32 0.2, %v926_v63  ;;  %v1016_v10 = vmul.f32 0.2, %v1012_v0  ;;  %v924_v11 = vadd.f32 %v909_v7, %v2492_v48  ;;  %v1010_v12 = vadd.f32 %v995_v8, %v2492_v48  ;;  %v2223_v17 = vpop.f32.mrf.mxu1  ;;  %v2229_v18 = vpop.f32.mrf.mxu0 }
  0xec   : > { %v2128_v13 = vpack.c.bf16 %v763_v1, %v763_v1  ;;  %v2132_v14 = vpack.c.bf16 %v849_v3, %v849_v3  ;;  %v761_v15 = vmax.f32 %v753_v56, %v757_v4  ;;  %v847_v16 = vmax.f32 %v839_v57, %v843_v6  ;;  %v1226_v29 = vld [vmem:[#allocation2 + $0x60] sm:$0xff] }
  0xed   : > { %v934_v19 = vmax.f32 %v926_v63, %v930_v9  ;;  %v1020_v20 = vmax.f32 %v1012_v0, %v1016_v10  ;;  %v928_v21 = vmul.f32 0.2, %v924_v11  ;;  %v1014_v22 = vmul.f32 0.2, %v1010_v12  ;;  %v912_v27 = vpop.f32.mrf.mxu1  ;;  %v998_v28 = vpop.f32.mrf.mxu0 }
  0xee   : > { %783 = vst.msk [vmem:[#allocation2 + $0x68] sm:$0xf] %vm607_vm4, %v2128_v13  ;;  %869 = vst.msk [vmem:[#allocation2 + $0x6c] sm:$0xf] %vm607_vm4, %v2132_v14  ;;  %v2126_v23 = vpack.c.bf16 %v761_v15, %v761_v15  ;;  %v2130_v24 = vpack.c.bf16 %v847_v16, %v847_v16  ;;  %v927_v25 = vadd.f32 %v2223_v17, %v2498_v58 }
  0xef   : > { %v1013_v26 = vadd.f32 %v2229_v18, %v2498_v58  ;;  %v2135_v30 = vpack.c.bf16 %v934_v19, %v934_v19  ;;  %v2139_v31 = vpack.c.bf16 %v1020_v20, %v1020_v20  ;;  %v932_v32 = vmax.f32 %v924_v11, %v928_v21  ;;  %v2234_v39 = vpop.f32.mrf.mxu1  ;;  %v2240_v40 = vpop.f32.mrf.mxu0  ;;  %v1218_v41 = vld [vmem:[#allocation2 + $0x20] sm:$0xff] }
  0xf0   : > { %v1018_v33 = vmax.f32 %v1010_v12, %v1014_v22  ;;  %781 = vst.msk [vmem:[#allocation2 + $0x28] sm:$0xf] %vm607_vm4, %v2126_v23  ;;  %867 = vst.msk [vmem:[#allocation2 + $0x2c] sm:$0xf] %vm607_vm4, %v2130_v24  ;;  %v931_v34 = vmul.f32 0.2, %v927_v25  ;;  %v925_v36 = vadd.f32 %v912_v27, %v2500_v2  ;;  %v1011_v37 = vadd.f32 %v998_v28, %v2500_v2 }
  0xf1   : > { %v1017_v35 = vmul.f32 0.2, %v1013_v26  ;;  %954 = vst.msk [vmem:[#allocation2 + $0x50] sm:$0xf] %vm607_vm4, %v2135_v30  ;;  %1040 = vst.msk [vmem:[#allocation2 + $0x54] sm:$0xf] %vm607_vm4, %v2139_v31  ;;  %v2133_v42 = vpack.c.bf16 %v932_v32, %v932_v32  ;;  %v2081_v45 = vcombine.low %v1222_v38, %v1226_v29  ;;  %v2082_v46 = vcombine.high %v1222_v38, %v1226_v29  ;;  %v1081_v53 = vpop.f32.mrf.mxu1  ;;  %v1167_v54 = vpop.f32.mrf.mxu0 }
  0xf2   : > { %v2137_v43 = vpack.c.bf16 %v1018_v33, %v1018_v33  ;;  %v935_v47 = vmax.f32 %v927_v25, %v931_v34  ;;  %v929_v50 = vmul.f32 0.2, %v925_v36  ;;  %v1015_v51 = vmul.f32 0.2, %v1011_v37  ;;  %v1223_v29 = vld [vmem:[#allocation2 + $0x48] sm:$0xff] }
  0xf3   : > { %v1021_v49 = vmax.f32 %v1013_v26, %v1017_v35  ;;  %952 = vst.msk [vmem:[#allocation2 + $0x10] sm:$0xf] %vm607_vm4, %v2133_v42  ;;  %1395 = vmatprep.subr.bf16.mxu1 %v2082_v46  ;;  %v1098_v55 = vadd.f32 %v2234_v39, %v2490_v44  ;;  %v1184_v56 = vadd.f32 %v2240_v40, %v2490_v44  ;;  %v2235_v0 = vpop.f32.mrf.mxu1  ;;  %v2241_v1 = vpop.f32.mrf.mxu0  ;;  %v1215_v38 = vld [vmem:[#allocation2 + $0x8] sm:$0xff] }
  0xf4   : > { %1038 = vst.msk [vmem:[#allocation2 + $0x14] sm:$0xf] %vm607_vm4, %v2137_v43  ;;  %v2073_v57 = vcombine.low %v1214_v52, %v1218_v41  ;;  %v2074_v59 = vcombine.high %v1214_v52, %v1218_v41  ;;  %v2136_v60 = vpack.c.bf16 %v935_v47, %v935_v47  ;;  %v933_v62 = vmax.f32 %v925_v36, %v929_v50  ;;  %v2275_v47 = vld [vmem:[%s2768_s5 + $0x8] sm:$0xff]  }
  0xf5   : > { %v2140_v61 = vpack.c.bf16 %v1021_v49, %v1021_v49  ;;  %v1019_v63 = vmax.f32 %v1011_v37, %v1015_v51  ;;  %1396 = vmatpush1.bf16.msra.mxu1 %v2081_v45  ;;  %v1102_v3 = vmul.f32 0.2, %v1098_v55  ;;  %v1188_v4 = vmul.f32 0.2, %v1184_v56  ;;  %v1084_v11 = vpop.f32.mrf.mxu1  ;;  %v1170_v12 = vpop.f32.mrf.mxu0  ;;  %v1227_v20 = vld [vmem:[#allocation2 + $0x68] sm:$0xff] }
  0xf6   : > { %1397 = vmatprep.subr.bf16.mxu1 %v2074_v59  ;;  %v1096_v6 = vadd.f32 %v1081_v53, %v2492_v48  ;;  %v1182_v7 = vadd.f32 %v1167_v54, %v2492_v48  ;;  %955 = vst.msk [vmem:[#allocation2 + $0x70] sm:$0xf] %vm607_vm4, %v2136_v60  ;;  %v2134_v44 = vpack.c.bf16 %v933_v62, %v933_v62  ;;  %v2553_v48 = vld [vmem:[%s2768_s5] sm:$0xff]   ;;  %v2276_v59 = vld [vmem:[%s2768_s5 + $0x10] sm:$0xff]  }
  0xf7   : > { %1041 = vst.msk [vmem:[#allocation2 + $0x74] sm:$0xf] %vm607_vm4, %v2140_v61  ;;  %v2138_v8 = vpack.c.bf16 %v1019_v63, %v1019_v63  ;;  %v1099_v9 = vadd.f32 %v2235_v0, %v2498_v58  ;;  %v1185_v10 = vadd.f32 %v2241_v1, %v2498_v58  ;;  %v1106_v13 = vmax.f32 %v1098_v55, %v1102_v3  ;;  %v1219_v30 = vld [vmem:[#allocation2 + $0x28] sm:$0xff]  ;;  %v2277_v0 = vld [vmem:[%s2768_s5 + $0x18] sm:$0xff]  }
  0xf8   : > { %v1192_v14 = vmax.f32 %v1184_v56, %v1188_v4  ;;  %v1100_v15 = vmul.f32 0.2, %v1096_v6  ;;  %v1186_v16 = vmul.f32 0.2, %v1182_v7  ;;  %953 = vst.msk [vmem:[#allocation2 + $0x30] sm:$0xf] %vm607_vm4, %v2134_v44  ;;  %v1097_v58 = vadd.f32 %v1084_v11, %v2500_v2 }
  0xf9   : > { %1039 = vst.msk [vmem:[#allocation2 + $0x34] sm:$0xf] %vm607_vm4, %v2138_v8  ;;  %v1103_v17 = vmul.f32 0.2, %v1099_v9  ;;  %v1189_v18 = vmul.f32 0.2, %v1185_v10  ;;  %1398 = vmatpush1.bf16.msra.mxu1 %v2073_v57  ;;  %v1183_v19 = vadd.f32 %v1170_v12, %v2500_v2  ;;  %v2143_v21 = vpack.c.bf16 %v1106_v13, %v1106_v13 }
  0xfa   : > { %v2147_v22 = vpack.c.bf16 %v1192_v14, %v1192_v14  ;;  %v1104_v23 = vmax.f32 %v1096_v6, %v1100_v15  ;;  %v1190_v24 = vmax.f32 %v1182_v7, %v1186_v16  ;;  %v1101_v27 = vmul.f32 0.2, %v1097_v58  ;;  %v1224_v40 = vld [vmem:[#allocation2 + $0x50] sm:$0xff]  ;;  %v2610_v6 = vpop.permute.xlu0 %1232  ;;  %v2612_v7 = vpop.permute.xlu1 %1237 }
  0xfb   : > { %v1107_v25 = vmax.f32 %v1099_v9, %v1103_v17  ;;  %v1193_v26 = vmax.f32 %v1185_v10, %v1189_v18  ;;  %v1187_v28 = vmul.f32 0.2, %v1183_v19  ;;  %1126 = vst.msk [vmem:[#allocation2 + $0x58] sm:$0xf] %vm607_vm4, %v2143_v21  ;;  %v2083_v2 = vcombine.low %v1223_v29, %v1227_v20  ;;  %v1216_v49 = vld [vmem:[#allocation2 + $0x10] sm:$0xff] }
  0xfc   : > { %1212 = vst.msk [vmem:[#allocation2 + $0x5c] sm:$0xf] %vm607_vm4, %v2147_v22  ;;  %v2141_v31 = vpack.c.bf16 %v1104_v23, %v1104_v23  ;;  %v2145_v32 = vpack.c.bf16 %v1190_v24, %v1190_v24  ;;  %2089 = vmatmul.mubr.msk.bf16.vlgmr.msra.gmra.mxu1 %vm1370_vm5, %v2553_v48  ;;  %v2084_v33 = vcombine.high %v1223_v29, %v1227_v20 }
  0xfd   : > { %v2144_v34 = vpack.c.bf16 %v1107_v25, %v1107_v25  ;;  %v2148_v35 = vpack.c.bf16 %v1193_v26, %v1193_v26  ;;  %v1105_v36 = vmax.f32 %v1097_v58, %v1101_v27  ;;  %v1191_v37 = vmax.f32 %v1183_v19, %v1187_v28  ;;  %1425 = vmatprep.mubr.bf16.mxu1 %v2303_v5 }
  0xfe   : > { %1124 = vst.msk [vmem:[#allocation2 + $0x18] sm:$0xf] %vm607_vm4, %v2141_v31  ;;  %1210 = vst.msk [vmem:[#allocation2 + $0x1c] sm:$0xf] %vm607_vm4, %v2145_v32  ;;  %1468 = vmatprep.subr.bf16.mxu0 %v2084_v33  ;;  %v2076_v39 = vcombine.high %v1215_v38, %v1219_v30  ;;  %v1228_v41 = vld [vmem:[#allocation2 + $0x70] sm:$0xff]  ;;  %v2075_v51 = vcombine.low %v1215_v38, %v1219_v30  ;;  %v2618_v15 = vpop.permute.xlu0 %1242  ;;  %v2623_v21 = vpop.permute.xlu1 %1247 }
  0xff   : > { %1127 = vst.msk [vmem:[#allocation2 + $0x78] sm:$0xf] %vm607_vm4, %v2144_v34  ;;  %1213 = vst.msk [vmem:[#allocation2 + $0x7c] sm:$0xf] %vm607_vm4, %v2148_v35  ;;  %v2142_v42 = vpack.c.bf16 %v1105_v36, %v1105_v36  ;;  %v2146_v43 = vpack.c.bf16 %v1191_v37, %v1191_v37  ;;  %1469 = vmatpush1.bf16.msra.mxu0 %v2083_v2  ;;  %v2085_v45 = vcombine.low %v1224_v40, %v1228_v41 }
 0x100   : > { %v2086_v46 = vcombine.high %v1224_v40, %v1228_v41  ;;  %1470 = vmatprep.subr.bf16.mxu0 %v2076_v39  ;;  %v1220_v50 = vld [vmem:[#allocation2 + $0x30] sm:$0xff] }
 0x101   : > { %1125 = vst.msk [vmem:[#allocation2 + $0x38] sm:$0xf] %vm607_vm4, %v2142_v42  ;;  %1211 = vst.msk [vmem:[#allocation2 + $0x3c] sm:$0xf] %vm607_vm4, %v2146_v43  ;;  %v2078_v52 = vcombine.high %v1216_v49, %v1220_v50  ;;  %v2077_v53 = vcombine.low %v1216_v49, %v1220_v50 }
 0x102   : > { %1541 = vmatprep.subr.bf16.mxu1 %v2086_v46  ;;  %v2629_v38 = vpop.permute.xlu0 %1252 }
 0x103   : > { %1542 = vmatpush1.bf16.msra.mxu1 %v2085_v45  ;;  %1471 = vmatpush1.bf16.msra.mxu0 %v2075_v51  ;;  %v1225_v54 = vld [vmem:[#allocation2 + $0x58] sm:$0xff] }
 0x104   : > { %1543 = vmatprep.subr.bf16.mxu1 %v2078_v52  ;;  %2090 = vmatmul.mubr.msk.bf16.gmra.mxu1 %vm1370_vm5, %v2275_v47 }
 0x105   : > { %1435 = vmatprep.mubr.bf16.mxu1 %v2303_v5  ;;  %v1217_v60 = vld [vmem:[#allocation2 + $0x18] sm:$0xff] }
 0x106   : > { %2093 = vmatmul.mubr.msk.bf16.vlgmr.msra.gmra.mxu0 %vm1370_vm5, %v2553_v48  ;;  %v1229_v55 = vld [vmem:[#allocation2 + $0x78] sm:$0xff] }
 0x107   : > { %1544 = vmatpush1.bf16.msra.mxu1 %v2077_v53  ;;  %1498 = vmatprep.mubr.bf16.mxu0 %v2303_v5  ;;  %v2087_v56 = vcombine.low %v1225_v54, %v1229_v55  ;;  %v2088_v57 = vcombine.high %v1225_v54, %v1229_v55 }
 0x108   : > { %v1221_v61 = vld [vmem:[#allocation2 + $0x38] sm:$0xff] }
 0x109   : > { %1614 = vmatprep.subr.bf16.mxu0 %v2088_v57  ;;  %v2080_v62 = vcombine.high %v1217_v60, %v1221_v61  ;;  %v2079_v63 = vcombine.low %v1217_v60, %v1221_v61  ;;  %v2639_v61 = vpop.permute.xlu1 %1257 }
 0x10a   : > { %1615 = vmatpush1.bf16.msra.mxu0 %v2087_v56 }
 0x10b   : > { %1616 = vmatprep.subr.bf16.mxu0 %v2080_v62 }
 0x10c   : > { %2091 = vmatmul.mubr.msk.bf16.gmra.mxu1 %vm1370_vm5, %v2276_v59 }
 0x10d   : > { %1445 = vmatprep.mubr.bf16.mxu1 %v2303_v5 }
 0x10e   : > { %2094 = vmatmul.mubr.msk.bf16.gmra.mxu0 %vm1370_vm5, %v2275_v47 }
 0x10f   : > { %1617 = vmatpush1.bf16.msra.mxu0 %v2079_v63  ;;  %1508 = vmatprep.mubr.bf16.mxu0 %v2303_v5 }
 0x114   : > { %2092 = vmatmul.mubr.msk.bf16.gmra.mxu1 %vm1370_vm5, %v2277_v0 }
 0x115   : > { %1561 = vmatprep.mubr.bf16.mxu1 %v2303_v5 }
 0x116   : > { %2095 = vmatmul.mubr.msk.bf16.gmra.mxu0 %vm1370_vm5, %v2276_v59 }
 0x117   : > { %1518 = vmatprep.mubr.bf16.mxu0 %v2303_v5 }
 0x11c   : > { %2097 = vmatmul.mubr.msk.bf16.vlgmr.msra.gmra.mxu1 %vm1370_vm5, %v2553_v48 }
 0x11d   : > { %1571 = vmatprep.mubr.bf16.mxu1 %v2303_v5 }
 0x11e   : > { %2096 = vmatmul.mubr.msk.bf16.gmra.mxu0 %vm1370_vm5, %v2277_v0 }
 0x11f   : > { %1634 = vmatprep.mubr.bf16.mxu0 %v2303_v5 }
 0x124   : > { %2098 = vmatmul.mubr.msk.bf16.gmra.mxu1 %vm1370_vm5, %v2275_v47 }
 0x125   : > { %1581 = vmatprep.mubr.bf16.mxu1 %v2303_v5 }
 0x126   : > { %2101 = vmatmul.mubr.msk.bf16.vlgmr.msra.gmra.mxu0 %vm1370_vm5, %v2553_v48 }
 0x127   : > { %1644 = vmatprep.mubr.bf16.mxu0 %v2303_v5 }
 0x12c   : > { %2099 = vmatmul.mubr.msk.bf16.gmra.mxu1 %vm1370_vm5, %v2276_v59 }
 0x12d   : > { %1591 = vmatprep.mubr.bf16.mxu1 %v2303_v5 }
 0x12e   : > { %2102 = vmatmul.mubr.msk.bf16.gmra.mxu0 %vm1370_vm5, %v2275_v47 }
 0x12f   : > { %1654 = vmatprep.mubr.bf16.mxu0 %v2303_v5 }
 0x134   : > { %2100 = vmatmul.mubr.msk.bf16.gmra.mxu1 %vm1370_vm5, %v2277_v0 }
 0x136   : > { %2103 = vmatmul.mubr.msk.bf16.gmra.mxu0 %vm1370_vm5, %v2276_v59 }
 0x137   : > { %1664 = vmatprep.mubr.bf16.mxu0 %v2303_v5 }
 0x13e   : > { %2104 = vmatmul.mubr.msk.bf16.gmra.mxu0 %vm1370_vm5, %v2277_v0 }
 0x1bc   : > { %v1417_v1 = vpop.f32.mrf.mxu1 }
 0x1bd   : > { %v1418_v9 = vadd.f32 %v1417_v1, %v2610_v6 }
 0x1be   : > { %v1419_v3 = vpop.f32.mrf.mxu1 }
 0x1bf   : > { %v1420_v44 = vadd.f32 %v1419_v3, %v2610_v6  ;;  %v1675_v16 = vmul.f32 0.2, %v1418_v9 }
 0x1c0   : > { %v1421_v4 = vpop.f32.mrf.mxu1 }
 0x1c1   : > { %v1422_v12 = vadd.f32 %v1421_v4, %v2612_v7  ;;  %v1676_v5 = vmul.f32 0.2, %v1420_v44  ;;  %v1739_v29 = vmax.f32 %v1418_v9, %v1675_v16 }
 0x1c2   : > { %v1423_v8 = vpop.f32.mrf.mxu1 }
 0x1c3   : > { %v1424_v10 = vadd.f32 %v1423_v8, %v2612_v7  ;;  %v1683_v22 = vmul.f32 0.2, %v1422_v12  ;;  %v1740_v24 = vmax.f32 %v1420_v44, %v1676_v5 }
 0x1c4   : > { %v1427_v11 = vpop.f32.mrf.mxu1 }
 0x1c5   : > { %v1684_v48 = vmul.f32 0.2, %v1424_v10  ;;  %v1428_v18 = vadd.f32 %v1427_v11, %v2618_v15  ;;  %v1747_v39 = vmax.f32 %v1422_v12, %v1683_v22  ;;  %v1803_v43 = vmax.f32 %v1739_v29, %v1740_v24 }
 0x1c6   : > { %v1490_v13 = vpop.f32.mrf.mxu0  ;;  %v1429_v14 = vpop.f32.mrf.mxu1 }
 0x1c7   : > { %v1491_v17 = vadd.f32 %v1490_v13, %v2610_v6  ;;  %v1430_v58 = vadd.f32 %v1429_v14, %v2618_v15  ;;  %v1748_v30 = vmax.f32 %v1424_v10, %v1684_v48  ;;  %v1691_v2 = vmul.f32 0.2, %v1428_v18 }
 0x1c8   : > { %v1492_v19 = vpop.f32.mrf.mxu0  ;;  %v1431_v20 = vpop.f32.mrf.mxu1 }
 0x1c9   : > { %v1677_v23 = vmul.f32 0.2, %v1491_v17  ;;  %v1493_v25 = vadd.f32 %v1492_v19, %v2610_v6  ;;  %v1432_v26 = vadd.f32 %v1431_v20, %v2623_v21  ;;  %v1692_v34 = vmul.f32 0.2, %v1430_v58  ;;  %v2647_v19 = vpop.permute.xlu0 %1262 }
 0x1ca   : > { %v1494_v27 = vpop.f32.mrf.mxu0  ;;  %v1433_v28 = vpop.f32.mrf.mxu1  ;;  %v1804_v50 = vmax.f32 %v1747_v39, %v1748_v30  ;;  %v1755_v54 = vmax.f32 %v1428_v18, %v1691_v2 }
 0x1cb   : > { %v1495_v31 = vadd.f32 %v1494_v27, %v2612_v7  ;;  %v1434_v32 = vadd.f32 %v1433_v28, %v2623_v21  ;;  %v1741_v33 = vmax.f32 %v1491_v17, %v1677_v23  ;;  %v1678_v35 = vmul.f32 0.2, %v1493_v25 }
 0x1cc   : > { %v1496_v36 = vpop.f32.mrf.mxu0  ;;  %v1437_v37 = vpop.f32.mrf.mxu1  ;;  %v1699_v40 = vmul.f32 0.2, %v1432_v26  ;;  %v1756_v56 = vmax.f32 %v1430_v58, %v1692_v34 }
 0x1cd   : > { %v1685_v41 = vmul.f32 0.2, %v1495_v31  ;;  %v1700_v42 = vmul.f32 0.2, %v1434_v32  ;;  %v1497_v45 = vadd.f32 %v1496_v36, %v2612_v7  ;;  %v2633_v46 = vadd.f32 %v1437_v37, %v2629_v38 }
 0x1ce   : > { %v1500_v47 = vpop.f32.mrf.mxu0  ;;  %v1439_v49 = vpop.f32.mrf.mxu1  ;;  %v1811_v55 = vmax.f32 %v1803_v43, %v1741_v33  ;;  %v1742_v62 = vmax.f32 %v1493_v25, %v1678_v35  ;;  %v1763_v63 = vmax.f32 %v1432_v26, %v1699_v40  ;;  %v1805_v14 = vmax.f32 %v1755_v54, %v1756_v56 }
 0x1cf   : > { %v1749_v51 = vmax.f32 %v1495_v31, %v1685_v41  ;;  %v1501_v52 = vadd.f32 %v1500_v47, %v2618_v15  ;;  %v2637_v53 = vadd.f32 %v1439_v49, %v2629_v38  ;;  %v1686_v57 = vmul.f32 0.2, %v1497_v45  ;;  %v2659_v41 = vpop.permute.xlu1 %1267 }
 0x1d0   : > { %v1502_v59 = vpop.f32.mrf.mxu0  ;;  %v1441_v60 = vpop.f32.mrf.mxu1  ;;  %v1764_v0 = vmax.f32 %v1434_v32, %v1700_v42  ;;  %v1707_v3 = vmul.f32 0.2, %v2633_v46  ;;  %v2649_v20 = vmax.f32 %v1811_v55, %v1742_v62 }
 0x1d1   : > { %v1693_v1 = vmul.f32 0.2, %v1501_v52  ;;  %v1708_v4 = vmul.f32 0.2, %v2637_v53  ;;  %v1503_v44 = vadd.f32 %v1502_v59, %v2618_v15  ;;  %v1442_v8 = vadd.f32 %v1441_v60, %v2639_v61 }
 0x1d2   : > { %v1504_v9 = vpop.f32.mrf.mxu0  ;;  %v1443_v10 = vpop.f32.mrf.mxu1  ;;  %v1812_v11 = vmax.f32 %v1804_v50, %v1749_v51  ;;  %v1750_v12 = vmax.f32 %v1497_v45, %v1686_v57  ;;  %v1806_v22 = vmax.f32 %v1763_v63, %v1764_v0  ;;  %v1771_v25 = vmax.f32 %v2633_v46, %v1707_v3 }
 0x1d3   : > { %v1505_v5 = vadd.f32 %v1504_v9, %v2623_v21  ;;  %v1444_v13 = vadd.f32 %v1443_v10, %v2639_v61  ;;  %v1757_v16 = vmax.f32 %v1501_v52, %v1693_v1  ;;  %v1694_v48 = vmul.f32 0.2, %v1503_v44 }
 0x1d4   : > { %v1715_v17 = vmul.f32 0.2, %v1442_v8  ;;  %v1506_v18 = vpop.f32.mrf.mxu0  ;;  %v1447_v58 = vpop.f32.mrf.mxu1  ;;  %v1772_v26 = vmax.f32 %v2637_v53, %v1708_v4  ;;  %v2655_v31 = vmax.f32 %v1812_v11, %v1750_v12 }
 0x1d5   : > { %v1701_v23 = vmul.f32 0.2, %v1505_v5  ;;  %v1716_v24 = vmul.f32 0.2, %v1444_v13  ;;  %v1507_v27 = vadd.f32 %v1506_v18, %v2623_v21  ;;  %v1448_v28 = vadd.f32 %v1447_v58, %v2647_v19 }
 0x1d6   : > { %v1510_v29 = vpop.f32.mrf.mxu0  ;;  %v1449_v30 = vpop.f32.mrf.mxu1  ;;  %v1813_v34 = vmax.f32 %v1805_v14, %v1757_v16  ;;  %v1758_v35 = vmax.f32 %v1503_v44, %v1694_v48  ;;  %v1779_v36 = vmax.f32 %v1442_v8, %v1715_v17  ;;  %v1807_v59 = vmax.f32 %v1771_v25, %v1772_v26 }
 0x1d7   : > { %v1765_v32 = vmax.f32 %v1505_v5, %v1701_v23  ;;  %v1511_v2 = vadd.f32 %v1510_v29, %v2629_v38  ;;  %v1450_v33 = vadd.f32 %v1449_v30, %v2647_v19  ;;  %v1702_v37 = vmul.f32 0.2, %v1507_v27 }
 0x1d8   : > { %v1512_v39 = vpop.f32.mrf.mxu0  ;;  %v1451_v40 = vpop.f32.mrf.mxu1  ;;  %v1780_v42 = vmax.f32 %v1444_v13, %v1716_v24  ;;  %v1723_v43 = vmul.f32 0.2, %v1448_v28  ;;  %v2665_v60 = vmax.f32 %v1813_v34, %v1758_v35 }
 0x1d9   : > { %v1709_v45 = vmul.f32 0.2, %v1511_v2  ;;  %v1724_v46 = vmul.f32 0.2, %v1450_v33  ;;  %v1814_v47 = vmax.f32 %v1806_v22, %v1765_v32  ;;  %v1766_v49 = vmax.f32 %v1507_v27, %v1702_v37 }
 0x1da   : > { %v1513_v50 = vadd.f32 %v1512_v39, %v2629_v38  ;;  %v1452_v51 = vadd.f32 %v1451_v40, %v2659_v41  ;;  %v1514_v52 = vpop.f32.mrf.mxu0  ;;  %v1453_v53 = vpop.f32.mrf.mxu1  ;;  %v1808_v3 = vmax.f32 %v1779_v36, %v1780_v42  ;;  %v1787_v4 = vmax.f32 %v1448_v28, %v1723_v43 }
 0x1db   : > { %v1773_v54 = vmax.f32 %v1511_v2, %v1709_v45  ;;  %v1788_v55 = vmax.f32 %v1450_v33, %v1724_v46  ;;  %v1515_v56 = vadd.f32 %v1514_v52, %v2639_v61  ;;  %v1454_v57 = vadd.f32 %v1453_v53, %v2659_v41 }
 0x1dc   : > { %v1710_v62 = vmul.f32 0.2, %v1513_v50  ;;  %v1731_v63 = vmul.f32 0.2, %v1452_v51  ;;  %v1516_v0 = vpop.f32.mrf.mxu0  ;;  %v1563_v1 = vpop.f32.mrf.mxu1  ;;  %v2667_v9 = vmax.f32 %v1814_v47, %v1766_v49 }
 0x1dd   : > { %v1717_v44 = vmul.f32 0.2, %v1515_v56  ;;  %v1732_v8 = vmul.f32 0.2, %v1454_v57  ;;  %v1815_v10 = vmax.f32 %v1807_v59, %v1773_v54  ;;  %v1517_v11 = vadd.f32 %v1516_v0, %v2639_v61 }
 0x1de   : > { %v1520_v12 = vpop.f32.mrf.mxu0  ;;  %v1564_v5 = vadd.f32 %v1563_v1, %v2610_v6  ;;  %v1565_v13 = vpop.f32.mrf.mxu1  ;;  %v1809_v14 = vmax.f32 %v1787_v4, %v1788_v55  ;;  %v1774_v18 = vmax.f32 %v1513_v50, %v1710_v62  ;;  %v1795_v58 = vmax.f32 %v1452_v51, %v1731_v63 }
 0x1df   : > { %v1781_v16 = vmax.f32 %v1515_v56, %v1717_v44  ;;  %v1521_v48 = vadd.f32 %v1520_v12, %v2647_v19  ;;  %v1566_v17 = vadd.f32 %v1565_v13, %v2610_v6  ;;  %v1718_v22 = vmul.f32 0.2, %v1517_v11 }
 0x1e0   : > { %v1679_v23 = vmul.f32 0.2, %v1564_v5  ;;  %v1522_v24 = vpop.f32.mrf.mxu0  ;;  %v1567_v25 = vpop.f32.mrf.mxu1  ;;  %v1796_v27 = vmax.f32 %v1454_v57, %v1732_v8  ;;  %v2677_v42 = vmax.f32 %v1815_v10, %v1774_v18 }
 0x1e1   : > { %v1816_v26 = vmax.f32 %v1808_v3, %v1781_v16  ;;  %v1725_v28 = vmul.f32 0.2, %v1521_v48  ;;  %v1523_v29 = vadd.f32 %v1522_v24, %v2647_v19  ;;  %v1782_v30 = vmax.f32 %v1517_v11, %v1718_v22 }
 0x1e2   : > { %v1743_v32 = vmax.f32 %v1564_v5, %v1679_v23  ;;  %v1680_v2 = vmul.f32 0.2, %v1566_v17  ;;  %v1524_v33 = vpop.f32.mrf.mxu0  ;;  %v1568_v34 = vadd.f32 %v1567_v25, %v2612_v7  ;;  %v1569_v35 = vpop.f32.mrf.mxu1  ;;  %v1810_v54 = vmax.f32 %v1795_v58, %v1796_v27 }
 0x1e3   : > { %v1789_v36 = vmax.f32 %v1521_v48, %v1725_v28  ;;  %v1726_v37 = vmul.f32 0.2, %v1523_v29  ;;  %v1525_v39 = vadd.f32 %v1524_v33, %v2659_v41  ;;  %v1570_v40 = vadd.f32 %v1569_v35, %v2612_v7 }
 0x1e4   : > { %v1827_v43 = vmax.f32 %v2649_v20, %v1743_v32  ;;  %v1744_v45 = vmax.f32 %v1566_v17, %v1680_v2  ;;  %v1687_v46 = vmul.f32 0.2, %v1568_v34  ;;  %v1526_v47 = vpop.f32.mrf.mxu0  ;;  %v1573_v49 = vpop.f32.mrf.mxu1  ;;  %v2684_v63 = vmax.f32 %v1816_v26, %v1782_v30 }
 0x1e5   : > { %v1817_v50 = vmax.f32 %v1809_v14, %v1789_v36  ;;  %v1790_v51 = vmax.f32 %v1523_v29, %v1726_v37  ;;  %v1733_v52 = vmul.f32 0.2, %v1525_v39  ;;  %v2681_v53 = vadd.f32 %v1526_v47, %v2659_v41 }
 0x1e6   : > { %v1751_v55 = vmax.f32 %v1568_v34, %v1687_v46  ;;  %v1688_v56 = vmul.f32 0.2, %v1570_v40  ;;  %v1574_v57 = vadd.f32 %v1573_v49, %v2618_v15  ;;  %v1636_v59 = vpop.f32.mrf.mxu0  ;;  %v1575_v62 = vpop.f32.mrf.mxu1  ;;  %v1835_v4 = vmax.f32 %v1827_v43, %v1744_v45 }
 0x1e7   : > { %v1797_v20 = vmax.f32 %v1525_v39, %v1733_v52  ;;  %v2687_v0 = vmul.f32 0.2, %v2681_v53  ;;  %v1637_v1 = vadd.f32 %v1636_v59, %v2610_v6  ;;  %v2690_v3 = vmax.f32 %v1817_v50, %v1790_v51 }
 0x1e8   : > { %v1695_v44 = vmul.f32 0.2, %v1574_v57  ;;  %v1576_v8 = vadd.f32 %v1575_v62, %v2618_v15  ;;  %v1638_v10 = vpop.f32.mrf.mxu0  ;;  %v1577_v11 = vpop.f32.mrf.mxu1  ;;  %v1828_v12 = vmax.f32 %v2655_v31, %v1751_v55  ;;  %v1752_v5 = vmax.f32 %v1570_v40, %v1688_v56 }
 0x1e9   : > { %v1681_v13 = vmul.f32 0.2, %v1637_v1  ;;  %v1639_v14 = vadd.f32 %v1638_v10, %v2610_v6  ;;  %v2695_v16 = vmax.f32 %v1810_v54, %v1797_v20  ;;  %v1578_v18 = vadd.f32 %v1577_v11, %v2623_v21 }
 0x1ea   : > { %v1759_v48 = vmax.f32 %v1574_v57, %v1695_v44  ;;  %v1696_v17 = vmul.f32 0.2, %v1576_v8  ;;  %v1640_v58 = vpop.f32.mrf.mxu0  ;;  %v1579_v22 = vpop.f32.mrf.mxu1  ;;  %v1798_v23 = vmax.f32 %v2681_v53, %v2687_v0  ;;  %v1836_v35 = vmax.f32 %v1828_v12, %v1752_v5 }
 0x1eb   : > { %v1745_v24 = vmax.f32 %v1637_v1, %v1681_v13  ;;  %v1682_v25 = vmul.f32 0.2, %v1639_v14  ;;  %v1641_v31 = vadd.f32 %v1640_v58, %v2612_v7  ;;  %v1703_v6 = vmul.f32 0.2, %v1578_v18 }
 0x1ec   : > { %v1829_v26 = vmax.f32 %v2665_v60, %v1759_v48  ;;  %v1760_v27 = vmax.f32 %v1576_v8, %v1696_v17  ;;  %v1580_v28 = vadd.f32 %v1579_v22, %v2623_v21  ;;  %v1642_v29 = vpop.f32.mrf.mxu0  ;;  %v1583_v30 = vpop.f32.mrf.mxu1 }
 0x1ed   : > { %v1843_v32 = vmax.f32 %v1835_v4, %v1745_v24  ;;  %v1746_v2 = vmax.f32 %v1639_v14, %v1682_v25  ;;  %v1689_v33 = vmul.f32 0.2, %v1641_v31  ;;  %v1643_v34 = vadd.f32 %v1642_v29, %v2612_v7 }
 0x1ee   : > { %v1767_v36 = vmax.f32 %v1578_v18, %v1703_v6  ;;  %v1704_v37 = vmul.f32 0.2, %v1580_v28  ;;  %v1584_v39 = vadd.f32 %v1583_v30, %v2629_v38  ;;  %v1646_v40 = vpop.f32.mrf.mxu0  ;;  %v1585_v43 = vpop.f32.mrf.mxu1  ;;  %v1837_v49 = vmax.f32 %v1829_v26, %v1760_v27 }
 0x1ef   : > { %v1851_v60 = vmax.f32 %v1843_v32, %v1746_v2  ;;  %v1753_v45 = vmax.f32 %v1641_v31, %v1689_v33  ;;  %v1690_v46 = vmul.f32 0.2, %v1643_v34  ;;  %v1647_v47 = vadd.f32 %v1646_v40, %v2618_v15 }
 0x1f0   : > { %v1830_v7 = vmax.f32 %v2667_v9, %v1767_v36  ;;  %v1711_v50 = vmul.f32 0.2, %v1584_v39  ;;  %v1586_v51 = vadd.f32 %v1585_v43, %v2629_v38  ;;  %v1648_v52 = vpop.f32.mrf.mxu0  ;;  %v1587_v54 = vpop.f32.mrf.mxu1  ;;  %v1768_v62 = vmax.f32 %v1580_v28, %v1704_v37 }
 0x1f1   : > { %v2149_v55 = vpack.c.bf16 %v1851_v60, %v1851_v60  ;;  %v1844_v56 = vmax.f32 %v1836_v35, %v1753_v45  ;;  %v1754_v57 = vmax.f32 %v1643_v34, %v1690_v46  ;;  %v1697_v59 = vmul.f32 0.2, %v1647_v47 }
 0x1f2   : > { %v1775_v20 = vmax.f32 %v1584_v39, %v1711_v50  ;;  %v1712_v1 = vmul.f32 0.2, %v1586_v51  ;;  %v1649_v4 = vadd.f32 %v1648_v52, %v2618_v15  ;;  %v1650_v44 = vpop.f32.mrf.mxu0  ;;  %v1589_v8 = vpop.f32.mrf.mxu1  ;;  %v1588_v11 = vadd.f32 %v1587_v54, %v2639_v61 }
 0x1f3   : > { %1891 = vst.msk [vmem:[%s2710_s24] sm:$0xf] %vm607_vm4, %v2149_v55  ;;  %v1852_v10 = vmax.f32 %v1844_v56, %v1754_v57  ;;  %v1761_v9 = vmax.f32 %v1647_v47, %v1697_v59  ;;  %v1651_v12 = vadd.f32 %v1650_v44, %v2623_v21  ;;  %v1590_v48 = vadd.f32 %v1589_v8, %v2639_v61 }
 0x1f4   : > { %v1831_v5 = vmax.f32 %v2677_v42, %v1775_v20  ;;  %v1776_v13 = vmax.f32 %v1586_v51, %v1712_v1  ;;  %v1698_v14 = vmul.f32 0.2, %v1649_v4  ;;  %v1652_v17 = vpop.f32.mrf.mxu0  ;;  %v1593_v18 = vpop.f32.mrf.mxu1  ;;  %v1719_v22 = vmul.f32 0.2, %v1588_v11 }
 0x1f5   : > { %v2150_v15 = vpack.c.bf16 %v1852_v10, %v1852_v10  ;;  %v1845_v58 = vmax.f32 %v1837_v49, %v1761_v9  ;;  %v1705_v24 = vmul.f32 0.2, %v1651_v12  ;;  %v1838_v25 = vmax.f32 %v1830_v7, %v1768_v62 }
 0x1f6   : > { %v1762_v31 = vmax.f32 %v1649_v4, %v1698_v14  ;;  %v1720_v26 = vmul.f32 0.2, %v1590_v48  ;;  %v1653_v27 = vadd.f32 %v1652_v17, %v2623_v21  ;;  %v1656_v6 = vpop.f32.mrf.mxu0  ;;  %v1595_v28 = vpop.f32.mrf.mxu1  ;;  %v1783_v42 = vmax.f32 %v1588_v11, %v1719_v22 }
 0x1f7   : > { %1892 = vst.msk [vmem:[%s2710_s24 + $0x4] sm:$0xf] %vm607_vm4, %v2150_v15  ;;  %v1769_v29 = vmax.f32 %v1651_v12, %v1705_v24  ;;  %v1594_v30 = vadd.f32 %v1593_v18, %v2647_v19  ;;  %v1657_v32 = vadd.f32 %v1656_v6, %v2629_v38  ;;  %v1839_v2 = vmax.f32 %v1831_v5, %v1776_v13 }
 0x1f8   : > { %v1853_v33 = vmax.f32 %v1845_v58, %v1762_v31  ;;  %v1706_v34 = vmul.f32 0.2, %v1653_v27  ;;  %v1596_v35 = vadd.f32 %v1595_v28, %v2647_v19  ;;  %v1658_v36 = vpop.f32.mrf.mxu0  ;;  %v1597_v37 = vpop.f32.mrf.mxu1  ;;  %v1784_v21 = vmax.f32 %v1590_v48, %v1720_v26 }
 0x1f9   : > { %v1846_v39 = vmax.f32 %v1838_v25, %v1769_v29  ;;  %v1727_v40 = vmul.f32 0.2, %v1594_v30  ;;  %v1713_v43 = vmul.f32 0.2, %v1657_v32  ;;  %v1659_v47 = vadd.f32 %v1658_v36, %v2629_v38 }
 0x1fa   : > { %v2151_v60 = vpack.c.bf16 %v1853_v33, %v1853_v33  ;;  %v1770_v45 = vmax.f32 %v1653_v27, %v1706_v34  ;;  %v1728_v46 = vmul.f32 0.2, %v1596_v35  ;;  %v1660_v49 = vpop.f32.mrf.mxu0  ;;  %v1599_v7 = vpop.f32.mrf.mxu1  ;;  %v1832_v50 = vmax.f32 %v2684_v63, %v1783_v42 }
 0x1fb   : > { %v1791_v51 = vmax.f32 %v1594_v30, %v1727_v40  ;;  %v1777_v52 = vmax.f32 %v1657_v32, %v1713_v43  ;;  %v1598_v54 = vadd.f32 %v1597_v37, %v2659_v41  ;;  %v1714_v57 = vmul.f32 0.2, %v1659_v47 }
 0x1fc   : > { %1893 = vst.msk [vmem:[%s2710_s24 + $0x8] sm:$0xf] %vm607_vm4, %v2151_v60  ;;  %v1854_v55 = vmax.f32 %v1846_v39, %v1770_v45  ;;  %v1792_v56 = vmax.f32 %v1596_v35, %v1728_v46  ;;  %v1661_v59 = vadd.f32 %v1660_v49, %v2639_v61  ;;  %v1662_v62 = vpop.f32.mrf.mxu0  ;;  %v1600_v4 = vadd.f32 %v1599_v7, %v2659_v41 }
 0x1fd   : > { %v1833_v20 = vmax.f32 %v2690_v3, %v1791_v51  ;;  %v1847_v38 = vmax.f32 %v1839_v2, %v1777_v52  ;;  %v1735_v1 = vmul.f32 0.2, %v1598_v54  ;;  %v1778_v44 = vmax.f32 %v1659_v47, %v1714_v57 }
 0x1fe   : > { %v2152_v63 = vpack.c.bf16 %v1854_v55, %v1854_v55  ;;  %v1721_v8 = vmul.f32 0.2, %v1661_v59  ;;  %v1663_v10 = vadd.f32 %v1662_v62, %v2639_v61  ;;  %v1666_v9 = vpop.f32.mrf.mxu0  ;;  %v1826_v11 = vmax.f32 %v2695_v16, %v1798_v23 }
 0x1ff   : > { %v1799_v12 = vmax.f32 %v1598_v54, %v1735_v1  ;;  %v1736_v5 = vmul.f32 0.2, %v1600_v4  ;;  %v1667_v13 = vadd.f32 %v1666_v9, %v2647_v19  ;;  %v1840_v3 = vmax.f32 %v1832_v50, %v1784_v21 }
 0x200   : > { %1894 = vst.msk [vmem:[%s2710_s24 + $0xc] sm:$0xf] %vm607_vm4, %v2152_v63  ;;  %v1855_v14 = vmax.f32 %v1847_v38, %v1778_v44  ;;  %v1785_v48 = vmax.f32 %v1661_v59, %v1721_v8  ;;  %v1722_v17 = vmul.f32 0.2, %v1663_v10  ;;  %v1668_v18 = vpop.f32.mrf.mxu0  ;;  %v1841_v15 = vmax.f32 %v1833_v20, %v1792_v56 }
 0x201   : > { %v1729_v61 = vmul.f32 0.2, %v1667_v13  ;;  %v1669_v58 = vadd.f32 %v1668_v18, %v2647_v19  ;;  %v1834_v53 = vmax.f32 %v1826_v11, %v1799_v12  ;;  %v1800_v24 = vmax.f32 %v1600_v4, %v1736_v5 }
 0x202   : > { %v2153_v22 = vpack.c.bf16 %v1855_v14, %v1855_v14  ;;  %v1848_v0 = vmax.f32 %v1840_v3, %v1785_v48  ;;  %v1786_v16 = vmax.f32 %v1663_v10, %v1722_v17  ;;  %v1670_v23 = vpop.f32.mrf.mxu0 }
 0x203   : > { %v1793_v25 = vmax.f32 %v1667_v13, %v1729_v61  ;;  %v1730_v31 = vmul.f32 0.2, %v1669_v58  ;;  %v1671_v26 = vadd.f32 %v1670_v23, %v2659_v41  ;;  %v1842_v32 = vmax.f32 %v1834_v53, %v1800_v24 }
 0x204   : > { %1895 = vst.msk [vmem:[%s2710_s24 + $0x10] sm:$0xf] %vm607_vm4, %v2153_v22  ;;  %v1856_v27 = vmax.f32 %v1848_v0, %v1786_v16  ;;  %v1672_v6 = vpop.f32.mrf.mxu0 }
 0x205   : > { %v1849_v28 = vmax.f32 %v1841_v15, %v1793_v25  ;;  %v1794_v42 = vmax.f32 %v1669_v58, %v1730_v31  ;;  %v1737_v19 = vmul.f32 0.2, %v1671_v26  ;;  %v1673_v29 = vadd.f32 %v1672_v6, %v2659_v41 }
 0x206   : > { %v2154_v30 = vpack.c.bf16 %v1856_v27, %v1856_v27 }
 0x207   : > { %v1857_v2 = vmax.f32 %v1849_v28, %v1794_v42  ;;  %v1801_v33 = vmax.f32 %v1671_v26, %v1737_v19  ;;  %v1738_v34 = vmul.f32 0.2, %v1673_v29 }
 0x208   : > { %1896 = vst.msk [vmem:[%s2710_s24 + $0x14] sm:$0xf] %vm607_vm4, %v2154_v30 }
 0x209   : > { %v2155_v35 = vpack.c.bf16 %v1857_v2, %v1857_v2  ;;  %v1850_v36 = vmax.f32 %v1842_v32, %v1801_v33  ;;  %v1802_v37 = vmax.f32 %v1673_v29, %v1738_v34 }
 0x20b   : > { %1897 = vst.msk [vmem:[%s2710_s24 + $0x18] sm:$0xf] %vm607_vm4, %v2155_v35  ;;  %v1858_v39 = vmax.f32 %v1850_v36, %v1802_v37 }
 0x20d   : > { %v2156_v21 = vpack.c.bf16 %v1858_v39, %v1858_v39 }
 0x20f   : > { %1898 = vst.msk [vmem:[%s2710_s24 + $0x1c] sm:$0xf] %vm607_vm4, %v2156_v21 }
 0x210 PF: > { %s17_s26 = sadd.s32 1, %s2300_s26   ;;  %s2771_s24 = smov %s2296_s25 }
 0x211   : > { %p14_p5 = scmp.ge.s32.totalorder %s17_s26, 4   ;;  %s2772_s25 = smov %s2774_s27 }
 0x213   :  { %16 = sbr.rel (!%p14_p5) target bundleno = 2 (0x2), region = 88 }

</bundles_post_ra>
